<compile_context>
chip_gen: v7x
topology: tpu7x:2x2x1
jax: 0.10.0
libtpu: 0.0.40
codegen_flags: <defaults>
</compile_context>

<pallas_src>
import functools

import jax
import jax.numpy as jnp
from jax.experimental import pallas as pl
from jax.experimental.pallas import tpu as pltpu

EPS = 1e-5
LANE = 128


def _round_up(x, m):
    return ((x + m - 1) // m) * m


# ---------------- Pallas kernels ----------------

def _conv3x3_row_kernel(x0_ref, x1_ref, x2_ref, w_ref, b_ref,
                        y_ref, ps_ref, pss_ref, *, Wo, Cin, Cp):
    """One output row of a 3x3/stride-1 conv: 9 accumulated MXU dots over the three padded
    input rows, fused bias add, and per-row BN partial sums (sum, sum of squares)."""
    rows = (x0_ref, x1_ref, x2_ref)
    acc = jnp.zeros((Wo, Cp), jnp.float32)
    for dh in range(3):
        for dw in range(3):
            t = dh * 3 + dw
            xs = rows[dh][0, 0, dw:dw + Wo, :]                     # (Wo, Cin) bf16
            acc = acc + jnp.dot(xs, w_ref[t * Cin:(t + 1) * Cin, :],
                                preferred_element_type=jnp.float32)
    acc = acc + b_ref[...]
    y_ref[0, 0, :, :] = acc
    ps_ref[0, 0, :, :] = jnp.sum(acc, axis=0, keepdims=True)
    pss_ref[0, 0, :, :] = jnp.sum(acc * acc, axis=0, keepdims=True)


def _upconv_row_kernel(x0_ref, x1_ref, w_ref, b_ref,
                       y_ref, ps_ref, pss_ref, *, W, Cin):
    """Sub-pixel ConvTranspose2d(k=3,s=2,p=1,op=1): for one input row produce the 4 output
    phases (even/odd oh x even/odd ow) packed along the channel axis, via 4 accumulated
    (W, Cin) @ (Cin, 4*Cp) MXU dots.  Fused bias + BN partial sums."""
    acc = jnp.dot(x0_ref[0, 0, 0:W, :], w_ref[0 * Cin:1 * Cin, :],
                  preferred_element_type=jnp.float32)
    acc = acc + jnp.dot(x0_ref[0, 0, 1:W + 1, :], w_ref[1 * Cin:2 * Cin, :],
                        preferred_element_type=jnp.float32)
    acc = acc + jnp.dot(x1_ref[0, 0, 0:W, :], w_ref[2 * Cin:3 * Cin, :],
                        preferred_element_type=jnp.float32)
    acc = acc + jnp.dot(x1_ref[0, 0, 1:W + 1, :], w_ref[3 * Cin:4 * Cin, :],
                        preferred_element_type=jnp.float32)
    acc = acc + b_ref[...]
    y_ref[0, 0, :, :] = acc
    ps_ref[0, 0, :, :] = jnp.sum(acc, axis=0, keepdims=True)
    pss_ref[0, 0, :, :] = jnp.sum(acc * acc, axis=0, keepdims=True)


# ---------------- pallas_call wrappers ----------------

def conv3x3_fused(xpad_bf16, wmat, bias):
    """xpad: (N, Ho+2, Wo+2, Cin) bf16 (zero-padded post-activation input),
       wmat: (9*Cin, Cp) bf16, bias: (1, Cp) f32.
       Returns y (N, Ho, Wo, Cp) f32 plus per-row BN partials (N, Ho, 1, Cp)."""
    N, Hp2, Wp2, Cin = xpad_bf16.shape
    Ho, Wo = Hp2 - 2, Wp2 - 2
    Cp = wmat.shape[1]
    kern = functools.partial(_conv3x3_row_kernel, Wo=Wo, Cin=Cin, Cp=Cp)
    return pl.pallas_call(
        kern,
        out_shape=(jax.ShapeDtypeStruct((N, Ho, Wo, Cp), jnp.float32),
                   jax.ShapeDtypeStruct((N, Ho, 1, Cp), jnp.float32),
                   jax.ShapeDtypeStruct((N, Ho, 1, Cp), jnp.float32)),
        grid_spec=pltpu.PrefetchScalarGridSpec(
            num_scalar_prefetch=0,
            grid=(N, Ho),
            in_specs=[pl.BlockSpec((1, 1, Wp2, Cin), lambda n, h: (n, h, 0, 0)),
                      pl.BlockSpec((1, 1, Wp2, Cin), lambda n, h: (n, h + 1, 0, 0)),
                      pl.BlockSpec((1, 1, Wp2, Cin), lambda n, h: (n, h + 2, 0, 0)),
                      pl.BlockSpec((9 * Cin, Cp), lambda n, h: (0, 0)),
                      pl.BlockSpec((1, Cp), lambda n, h: (0, 0))],
            out_specs=(pl.BlockSpec((1, 1, Wo, Cp), lambda n, h: (n, h, 0, 0)),
                       pl.BlockSpec((1, 1, 1, Cp), lambda n, h: (n, h, 0, 0)),
                       pl.BlockSpec((1, 1, 1, Cp), lambda n, h: (n, h, 0, 0)))),
        compiler_params=pltpu.CompilerParams(
            dimension_semantics=("parallel", "parallel")),
    )(xpad_bf16, xpad_bf16, xpad_bf16, wmat, bias)


def upconv_fused(xq_bf16, wmat, bias):
    """xq: (N, H+1, W+1, Cin) bf16 (x zero-padded by 1 on bottom/right),
       wmat: (4*Cin, 4*Cp) bf16 sub-pixel block weight, bias: (1, 4*Cp) f32.
       Returns y (N, H, W, 4*Cp) f32 (phases packed on channels) + BN partials."""
    N, Hq, Wq, Cin = xq_bf16.shape
    H, W = Hq - 1, Wq - 1
    Cp4 = wmat.shape[1]
    kern = functools.partial(_upconv_row_kernel, W=W, Cin=Cin)
    return pl.pallas_call(
        kern,
        out_shape=(jax.ShapeDtypeStruct((N, H, W, Cp4), jnp.float32),
                   jax.ShapeDtypeStruct((N, H, 1, Cp4), jnp.float32),
                   jax.ShapeDtypeStruct((N, H, 1, Cp4), jnp.float32)),
        grid_spec=pltpu.PrefetchScalarGridSpec(
            num_scalar_prefetch=0,
            grid=(N, H),
            in_specs=[pl.BlockSpec((1, 1, Wq, Cin), lambda n, m: (n, m, 0, 0)),
                      pl.BlockSpec((1, 1, Wq, Cin), lambda n, m: (n, m + 1, 0, 0)),
                      pl.BlockSpec((4 * Cin, Cp4), lambda n, m: (0, 0)),
                      pl.BlockSpec((1, Cp4), lambda n, m: (0, 0))],
            out_specs=(pl.BlockSpec((1, 1, W, Cp4), lambda n, m: (n, m, 0, 0)),
                       pl.BlockSpec((1, 1, 1, Cp4), lambda n, m: (n, m, 0, 0)),
                       pl.BlockSpec((1, 1, 1, Cp4), lambda n, m: (n, m, 0, 0)))),
        compiler_params=pltpu.CompilerParams(
            dimension_semantics=("parallel", "parallel")),
    )(xq_bf16, xq_bf16, wmat, bias)


# ---------------- parameters (deterministic synthetic init) ----------------

def init_params(key, in_ch, out_ch):
    Cp = _round_up(out_ch, LANE)
    ks = jax.random.split(key, 6)
    p = {}

    # ConvTranspose2d weight (in_ch, out_ch, 3, 3) -> sub-pixel block weight.
    wt = 0.1 * jax.random.normal(ks[0], (in_ch, out_ch, 3, 3), jnp.float32)
    bt = 0.1 * jax.random.normal(ks[1], (out_ch,), jnp.float32)

    def tap(kh, kw):
        return jnp.pad(wt[:, :, kh, kw], ((0, 0), (0, Cp - out_ch)))

    z = jnp.zeros((in_ch, Cp), jnp.float32)
    # rows: features [x(m,p); x(m,p+1); x(m+1,p); x(m+1,p+1)]
    # cols: output phases [(oh even, ow even) | (even, odd) | (odd, even) | (odd, odd)]
    row00 = jnp.concatenate([tap(1, 1), tap(1, 2), tap(2, 1), tap(2, 2)], axis=1)
    row01 = jnp.concatenate([z,         tap(1, 0), z,         tap(2, 0)], axis=1)
    row10 = jnp.concatenate([z,         z,         tap(0, 1), tap(0, 2)], axis=1)
    row11 = jnp.concatenate([z,         z,         z,         tap(0, 0)], axis=1)
    p['up_w'] = jnp.concatenate([row00, row01, row10, row11], axis=0).astype(jnp.bfloat16)
    p['up_b'] = jnp.tile(jnp.pad(bt, (0, Cp - out_ch)), 4).reshape(1, 4 * Cp)
    p['up_gamma'] = jnp.ones((out_ch,), jnp.float32)
    p['up_beta'] = jnp.zeros((out_ch,), jnp.float32)

    def conv_pack(w):  # (out_ch, cin, 3, 3) -> (9*cin, Cp), tap order (kh, kw) row blocks
        mats = [jnp.pad(w[:, :, kh, kw].T, ((0, 0), (0, Cp - out_ch)))
                for kh in range(3) for kw in range(3)]
        return jnp.concatenate(mats, axis=0).astype(jnp.bfloat16)

    w1 = 0.1 * jax.random.normal(ks[2], (out_ch, 2 * out_ch, 3, 3), jnp.float32)
    p['c1_w'] = conv_pack(w1)
    p['c1_b'] = jnp.pad(0.1 * jax.random.normal(ks[3], (out_ch,), jnp.float32),
                        (0, Cp - out_ch)).reshape(1, Cp)
    p['c1_gamma'] = jnp.ones((out_ch,), jnp.float32)
    p['c1_beta'] = jnp.zeros((out_ch,), jnp.float32)

    w2 = 0.1 * jax.random.normal(ks[4], (out_ch, out_ch, 3, 3), jnp.float32)
    p['c2_w'] = conv_pack(w2)
    p['c2_b'] = jnp.pad(0.1 * jax.random.normal(ks[5], (out_ch,), jnp.float32),
                        (0, Cp - out_ch)).reshape(1, Cp)
    p['c2_gamma'] = jnp.ones((out_ch,), jnp.float32)
    p['c2_beta'] = jnp.zeros((out_ch,), jnp.float32)
    return p


# ---------------- BN fold (tiny JAX reductions on kernel partials) ----------------

def _fold_bn(s, ss, gamma, beta, count):
    mean = s / count
    var = jnp.maximum(ss / count - mean * mean, 0.0)   # biased var (PyTorch train-mode fwd)
    scale = gamma * jax.lax.rsqrt(var + EPS)
    shift = beta - mean * scale
    return scale, shift


# ---------------- UpBlock2d forward ----------------

def upblock2d_forward(params, x_nchw, down_nchw):
    x = jnp.transpose(x_nchw, (0, 2, 3, 1)).astype(jnp.float32)        # NCHW -> NHWC
    down = jnp.transpose(down_nchw, (0, 2, 3, 1)).astype(jnp.float32)
    N, H, W, _ = x.shape
    C = params['up_gamma'].shape[0]
    Cp = params['c1_w'].shape[1]

    # --- up-conv: ConvTranspose2d(stride=2) via sub-pixel phases (Pallas) ---
    xq = jnp.pad(x, ((0, 0), (0, 1), (0, 1), (0, 0))).astype(jnp.bfloat16)
    y_up, ps, pss = upconv_fused(xq, params['up_w'], params['up_b'])
    cnt_up = N * H * W * 4                                             # = N*(2H)*(2W)
    s = ps.sum(axis=(0, 1, 2)).reshape(4, Cp)[:, :C].sum(axis=0)
    ss = pss.sum(axis=(0, 1, 2)).reshape(4, Cp)[:, :C].sum(axis=0)
    scale_u, shift_u = _fold_bn(s, ss, params['up_gamma'], params['up_beta'], cnt_up)
    # interleave phases -> (N, 2H, 2W, C) with BN + ReLU fused into the same XLA pass
    yp = y_up.reshape(N, H, W, 4, Cp)[..., :C]
    yp = yp.reshape(N, H, W, 2, 2, C).transpose(0, 1, 3, 2, 4, 5).reshape(N, 2 * H, 2 * W, C)
    a_up = jnp.maximum(yp * scale_u + shift_u, 0.0)

    # --- concat with skip features + zero pad (single fused XLA pass) -> conv1 ---
    cat = jnp.concatenate([a_up, down], axis=-1)                       # channels: [up, down]
    x1 = jnp.pad(cat, ((0, 0), (1, 1), (1, 1), (0, 0))).astype(jnp.bfloat16)
    y1, ps1, pss1 = conv3x3_fused(x1, params['c1_w'], params['c1_b'])
    cnt = N * (2 * H) * (2 * W)
    scale1, shift1 = _fold_bn(ps1.sum(axis=(0, 1, 2))[:C], pss1.sum(axis=(0, 1, 2))[:C],
                              params['c1_gamma'], params['c1_beta'], cnt)
    a1 = jnp.maximum(y1[..., :C] * scale1 + shift1, 0.0)

    # --- conv2 ---
    x2 = jnp.pad(a1, ((0, 0), (1, 1), (1, 1), (0, 0))).astype(jnp.bfloat16)
    y2, ps2, pss2 = conv3x3_fused(x2, params['c2_w'], params['c2_b'])
    scale2, shift2 = _fold_bn(ps2.sum(axis=(0, 1, 2))[:C], pss2.sum(axis=(0, 1, 2))[:C],
                              params['c2_gamma'], params['c2_beta'], cnt)
    a2 = jnp.maximum(y2[..., :C] * scale2 + shift2, 0.0)

    return jnp.transpose(a2, (0, 3, 1, 2))                             # back to NCHW


if __name__ == "__main__":
    key = jax.random.PRNGKey(0)
    k1, k2, k3 = jax.random.split(key, 3)
    in_ch, out_ch = 8, 4
    N, H, W = 2, 16, 16
    x = jax.random.normal(k1, (N, in_ch, H, W), jnp.float32)
    down_features = jax.random.normal(k2, (N, out_ch, 2 * H, 2 * W), jnp.float32)
    params = init_params(k3, in_ch, out_ch)

    out = jax.jit(upblock2d_forward)(params, x, down_features)
    jax.block_until_ready(out)
    assert out.shape == (N, out_ch, 2 * H, 2 * W), out.shape
    print("KERNEL_OK")
</pallas_src>

<mosaic_0001>
module attributes {stable_mosaic.version = 11 : i64} {
  func.func @_upconv_row_kernel(%arg0: i32, %arg1: i32, %arg2: memref<1x1x17x8xbf16, #tpu.memory_space<vmem>>, %arg3: memref<1x1x17x8xbf16, #tpu.memory_space<vmem>>, %arg4: memref<32x512xbf16, #tpu.memory_space<vmem>>, %arg5: memref<1x512xf32, #tpu.memory_space<vmem>>, %arg6: memref<1x1x16x512xf32, #tpu.memory_space<vmem>>, %arg7: memref<1x1x1x512xf32, #tpu.memory_space<vmem>>, %arg8: memref<1x1x1x512xf32, #tpu.memory_space<vmem>>) attributes {dimension_semantics = [#tpu.dimension_semantics<parallel>, #tpu.dimension_semantics<parallel>], iteration_bounds = array<i64: 2, 16>, scalar_prefetch = 0 : i64, scratch_operands = 0 : i64, tpu.core_type = #tpu.core_type<tc>, window_params = [{transform_indices = @transform_0, window_bounds = array<i64: 1, 1, 17, 8>}, {transform_indices = @transform_1, window_bounds = array<i64: 1, 1, 17, 8>}, {pipeline_mode = #tpu.pipeline_mode<synchronous>, transform_indices = @transform_2, window_bounds = array<i64: 32, 512>}, {pipeline_mode = #tpu.pipeline_mode<synchronous>, transform_indices = @transform_3, window_bounds = array<i64: 1, 512>}, {transform_indices = @transform_4, window_bounds = array<i64: 1, 1, 16, 512>}, {transform_indices = @transform_5, window_bounds = array<i64: 1, 1, 1, 512>}, {transform_indices = @transform_6, window_bounds = array<i64: 1, 1, 1, 512>}]} {
    %c0 = arith.constant 0 : index
    %c0_0 = arith.constant 0 : index
    %c0_1 = arith.constant 0 : index
    %c0_2 = arith.constant 0 : index
    %0 = vector.load %arg2[%c0, %c0_0, %c0_1, %c0_2] : memref<1x1x17x8xbf16, #tpu.memory_space<vmem>>, vector<1x1x16x8xbf16>
    %1 = vector.shape_cast %0 : vector<1x1x16x8xbf16> to vector<16x8xbf16>
    %c0_3 = arith.constant 0 : index
    %c0_4 = arith.constant 0 : index
    %2 = vector.load %arg4[%c0_3, %c0_4] : memref<32x512xbf16, #tpu.memory_space<vmem>>, vector<8x512xbf16>
    %cst = arith.constant dense<0.000000e+00> : vector<16x512xf32>
    %3 = tpu.matmul %1, %2, %cst {dimension_numbers = #tpu.dot_dimension_numbers<[1], [0], [0], [1], [0, 0, 1, 1], [], []>} : vector<16x8xbf16>, vector<8x512xbf16>, vector<16x512xf32> -> vector<16x512xf32>
    %c0_5 = arith.constant 0 : index
    %c0_6 = arith.constant 0 : index
    %c1 = arith.constant 1 : index
    %c0_7 = arith.constant 0 : index
    %4 = vector.load %arg2[%c0_5, %c0_6, %c1, %c0_7] : memref<1x1x17x8xbf16, #tpu.memory_space<vmem>>, vector<1x1x16x8xbf16>
    %5 = vector.shape_cast %4 : vector<1x1x16x8xbf16> to vector<16x8xbf16>
    %c8 = arith.constant 8 : index
    %c0_8 = arith.constant 0 : index
    %6 = vector.load %arg4[%c8, %c0_8] : memref<32x512xbf16, #tpu.memory_space<vmem>>, vector<8x512xbf16>
    %cst_9 = arith.constant dense<0.000000e+00> : vector<16x512xf32>
    %7 = tpu.matmul %5, %6, %cst_9 {dimension_numbers = #tpu.dot_dimension_numbers<[1], [0], [0], [1], [0, 0, 1, 1], [], []>} : vector<16x8xbf16>, vector<8x512xbf16>, vector<16x512xf32> -> vector<16x512xf32>
    %8 = arith.addf %3, %7 : vector<16x512xf32>
    %c0_10 = arith.constant 0 : index
    %c0_11 = arith.constant 0 : index
    %c0_12 = arith.constant 0 : index
    %c0_13 = arith.constant 0 : index
    %9 = vector.load %arg3[%c0_10, %c0_11, %c0_12, %c0_13] : memref<1x1x17x8xbf16, #tpu.memory_space<vmem>>, vector<1x1x16x8xbf16>
    %10 = vector.shape_cast %9 : vector<1x1x16x8xbf16> to vector<16x8xbf16>
    %c16 = arith.constant 16 : index
    %c0_14 = arith.constant 0 : index
    %11 = vector.load %arg4[%c16, %c0_14] : memref<32x512xbf16, #tpu.memory_space<vmem>>, vector<8x512xbf16>
    %cst_15 = arith.constant dense<0.000000e+00> : vector<16x512xf32>
    %12 = tpu.matmul %10, %11, %cst_15 {dimension_numbers = #tpu.dot_dimension_numbers<[1], [0], [0], [1], [0, 0, 1, 1], [], []>} : vector<16x8xbf16>, vector<8x512xbf16>, vector<16x512xf32> -> vector<16x512xf32>
    %13 = arith.addf %8, %12 : vector<16x512xf32>
    %c0_16 = arith.constant 0 : index
    %c0_17 = arith.constant 0 : index
    %c1_18 = arith.constant 1 : index
    %c0_19 = arith.constant 0 : index
    %14 = vector.load %arg3[%c0_16, %c0_17, %c1_18, %c0_19] : memref<1x1x17x8xbf16, #tpu.memory_space<vmem>>, vector<1x1x16x8xbf16>
    %15 = vector.shape_cast %14 : vector<1x1x16x8xbf16> to vector<16x8xbf16>
    %c24 = arith.constant 24 : index
    %c0_20 = arith.constant 0 : index
    %16 = vector.load %arg4[%c24, %c0_20] : memref<32x512xbf16, #tpu.memory_space<vmem>>, vector<8x512xbf16>
    %cst_21 = arith.constant dense<0.000000e+00> : vector<16x512xf32>
    %17 = tpu.matmul %15, %16, %cst_21 {dimension_numbers = #tpu.dot_dimension_numbers<[1], [0], [0], [1], [0, 0, 1, 1], [], []>} : vector<16x8xbf16>, vector<8x512xbf16>, vector<16x512xf32> -> vector<16x512xf32>
    %18 = arith.addf %13, %17 : vector<16x512xf32>
    %c0_22 = arith.constant 0 : index
    %c0_23 = arith.constant 0 : index
    %19 = vector.load %arg5[%c0_22, %c0_23] : memref<1x512xf32, #tpu.memory_space<vmem>>, vector<1x512xf32>
    %20 = vector.broadcast %19 : vector<1x512xf32> to vector<16x512xf32>
    %21 = arith.addf %18, %20 : vector<16x512xf32>
    %c0_24 = arith.constant 0 : index
    %c0_25 = arith.constant 0 : index
    %c0_26 = arith.constant 0 : index
    %c0_27 = arith.constant 0 : index
    %22 = vector.load %arg6[%c0_24, %c0_25, %c0_26, %c0_27] : memref<1x1x16x512xf32, #tpu.memory_space<vmem>>, vector<1x1x16x512xf32>
    %23 = vector.shape_cast %22 : vector<1x1x16x512xf32> to vector<16x512xf32>
    %24 = vector.shape_cast %21 : vector<16x512xf32> to vector<1x1x16x512xf32>
    tpu.vector_store %arg6[%c0_24, %c0_25, %c0_26, %c0_27], %24 {strides = array<i32>} : memref<1x1x16x512xf32, #tpu.memory_space<vmem>>, vector<1x1x16x512xf32>,
    %cst_28 = arith.constant dense<0.000000e+00> : vector<512xf32>
    %25 = vector.multi_reduction <add>, %21, %cst_28 [0] : vector<16x512xf32> to vector<512xf32>
    %26 = vector.shape_cast %25 : vector<512xf32> to vector<1x512xf32>
    %c0_29 = arith.constant 0 : index
    %c0_30 = arith.constant 0 : index
    %c0_31 = arith.constant 0 : index
    %c0_32 = arith.constant 0 : index
    %27 = vector.load %arg7[%c0_29, %c0_30, %c0_31, %c0_32] : memref<1x1x1x512xf32, #tpu.memory_space<vmem>>, vector<1x1x1x512xf32>
    %28 = vector.shape_cast %27 : vector<1x1x1x512xf32> to vector<1x512xf32>
    %29 = vector.shape_cast %26 : vector<1x512xf32> to vector<1x1x1x512xf32>
    tpu.vector_store %arg7[%c0_29, %c0_30, %c0_31, %c0_32], %29 {strides = array<i32>} : memref<1x1x1x512xf32, #tpu.memory_space<vmem>>, vector<1x1x1x512xf32>,
    %30 = arith.mulf %21, %21 : vector<16x512xf32>
    %cst_33 = arith.constant dense<0.000000e+00> : vector<512xf32>
    %31 = vector.multi_reduction <add>, %30, %cst_33 [0] : vector<16x512xf32> to vector<512xf32>
    %32 = vector.shape_cast %31 : vector<512xf32> to vector<1x512xf32>
    %c0_34 = arith.constant 0 : index
    %c0_35 = arith.constant 0 : index
    %c0_36 = arith.constant 0 : index
    %c0_37 = arith.constant 0 : index
    %33 = vector.load %arg8[%c0_34, %c0_35, %c0_36, %c0_37] : memref<1x1x1x512xf32, #tpu.memory_space<vmem>>, vector<1x1x1x512xf32>
    %34 = vector.shape_cast %33 : vector<1x1x1x512xf32> to vector<1x512xf32>
    %35 = vector.shape_cast %32 : vector<1x512xf32> to vector<1x1x1x512xf32>
    tpu.vector_store %arg8[%c0_34, %c0_35, %c0_36, %c0_37], %35 {strides = array<i32>} : memref<1x1x1x512xf32, #tpu.memory_space<vmem>>, vector<1x1x1x512xf32>,
    return
  }
  func.func @transform_0(%arg0: i32, %arg1: i32) -> (i32, i32, i32, i32) {
    %c0_i32 = arith.constant 0 : i32
    %c0_i32_0 = arith.constant 0 : i32
    %c0_i32_1 = arith.constant 0 : i32
    return %arg0, %arg1, %c0_i32, %c0_i32_0 : i32, i32, i32, i32
  }
  func.func @transform_1(%arg0: i32, %arg1: i32) -> (i32, i32, i32, i32) {
    %c1_i32 = arith.constant 1 : i32
    %0 = arith.addi %arg1, %c1_i32 : i32
    %c0_i32 = arith.constant 0 : i32
    %c0_i32_0 = arith.constant 0 : i32
    %c0_i32_1 = arith.constant 0 : i32
    return %arg0, %0, %c0_i32, %c0_i32_0 : i32, i32, i32, i32
  }
  func.func @transform_2(%arg0: i32, %arg1: i32) -> (i32, i32) {
    %c0_i32 = arith.constant 0 : i32
    %c0_i32_0 = arith.constant 0 : i32
    %c0_i32_1 = arith.constant 0 : i32
    return %c0_i32, %c0_i32_0 : i32, i32
  }
  func.func @transform_3(%arg0: i32, %arg1: i32) -> (i32, i32) {
    %c0_i32 = arith.constant 0 : i32
    %c0_i32_0 = arith.constant 0 : i32
    %c0_i32_1 = arith.constant 0 : i32
    return %c0_i32, %c0_i32_0 : i32, i32
  }
  func.func @transform_4(%arg0: i32, %arg1: i32) -> (i32, i32, i32, i32) {
    %c0_i32 = arith.constant 0 : i32
    %c0_i32_0 = arith.constant 0 : i32
    %c0_i32_1 = arith.constant 0 : i32
    return %arg0, %arg1, %c0_i32, %c0_i32_0 : i32, i32, i32, i32
  }
  func.func @transform_5(%arg0: i32, %arg1: i32) -> (i32, i32, i32, i32) {
    %c0_i32 = arith.constant 0 : i32
    %c0_i32_0 = arith.constant 0 : i32
    %c0_i32_1 = arith.constant 0 : i32
    return %arg0, %arg1, %c0_i32, %c0_i32_0 : i32, i32, i32, i32
  }
  func.func @transform_6(%arg0: i32, %arg1: i32) -> (i32, i32, i32, i32) {
    %c0_i32 = arith.constant 0 : i32
    %c0_i32_0 = arith.constant 0 : i32
    %c0_i32_1 = arith.constant 0 : i32
    return %arg0, %arg1, %c0_i32, %c0_i32_0 : i32, i32, i32, i32
  }
}

module attributes {stable_mosaic.version = 11 : i64} {
  func.func @_conv3x3_row_kernel(%arg0: i32, %arg1: i32, %arg2: memref<1x1x34x8xbf16, #tpu.memory_space<vmem>>, %arg3: memref<1x1x34x8xbf16, #tpu.memory_space<vmem>>, %arg4: memref<1x1x34x8xbf16, #tpu.memory_space<vmem>>, %arg5: memref<72x128xbf16, #tpu.memory_space<vmem>>, %arg6: memref<1x128xf32, #tpu.memory_space<vmem>>, %arg7: memref<1x1x32x128xf32, #tpu.memory_space<vmem>>, %arg8: memref<1x1x1x128xf32, #tpu.memory_space<vmem>>, %arg9: memref<1x1x1x128xf32, #tpu.memory_space<vmem>>) attributes {dimension_semantics = [#tpu.dimension_semantics<parallel>, #tpu.dimension_semantics<parallel>], iteration_bounds = array<i64: 2, 32>, scalar_prefetch = 0 : i64, scratch_operands = 0 : i64, tpu.core_type = #tpu.core_type<tc>, window_params = [{transform_indices = @transform_0, window_bounds = array<i64: 1, 1, 34, 8>}, {transform_indices = @transform_1, window_bounds = array<i64: 1, 1, 34, 8>}, {transform_indices = @transform_2, window_bounds = array<i64: 1, 1, 34, 8>}, {pipeline_mode = #tpu.pipeline_mode<synchronous>, transform_indices = @transform_3, window_bounds = array<i64: 72, 128>}, {pipeline_mode = #tpu.pipeline_mode<synchronous>, transform_indices = @transform_4, window_bounds = array<i64: 1, 128>}, {transform_indices = @transform_5, window_bounds = array<i64: 1, 1, 32, 128>}, {transform_indices = @transform_6, window_bounds = array<i64: 1, 1, 1, 128>}, {transform_indices = @transform_7, window_bounds = array<i64: 1, 1, 1, 128>}]} {
    %cst = arith.constant 0.000000e+00 : f32
    %0 = vector.broadcast %cst : f32 to vector<32x128xf32>
    %c0 = arith.constant 0 : index
    %c0_0 = arith.constant 0 : index
    %c0_1 = arith.constant 0 : index
    %c0_2 = arith.constant 0 : index
    %1 = vector.load %arg2[%c0, %c0_0, %c0_1, %c0_2] : memref<1x1x34x8xbf16, #tpu.memory_space<vmem>>, vector<1x1x32x8xbf16>
    %2 = vector.shape_cast %1 : vector<1x1x32x8xbf16> to vector<32x8xbf16>
    %c0_3 = arith.constant 0 : index
    %c0_4 = arith.constant 0 : index
    %3 = vector.load %arg5[%c0_3, %c0_4] : memref<72x128xbf16, #tpu.memory_space<vmem>>, vector<8x128xbf16>
    %cst_5 = arith.constant dense<0.000000e+00> : vector<32x128xf32>
    %4 = tpu.matmul %2, %3, %cst_5 {dimension_numbers = #tpu.dot_dimension_numbers<[1], [0], [0], [1], [0, 0, 1, 1], [], []>} : vector<32x8xbf16>, vector<8x128xbf16>, vector<32x128xf32> -> vector<32x128xf32>
    %5 = arith.addf %0, %4 : vector<32x128xf32>
    %c0_6 = arith.constant 0 : index
    %c0_7 = arith.constant 0 : index
    %c1 = arith.constant 1 : index
    %c0_8 = arith.constant 0 : index
    %6 = vector.load %arg2[%c0_6, %c0_7, %c1, %c0_8] : memref<1x1x34x8xbf16, #tpu.memory_space<vmem>>, vector<1x1x32x8xbf16>
    %7 = vector.shape_cast %6 : vector<1x1x32x8xbf16> to vector<32x8xbf16>
    %c8 = arith.constant 8 : index
    %c0_9 = arith.constant 0 : index
    %8 = vector.load %arg5[%c8, %c0_9] : memref<72x128xbf16, #tpu.memory_space<vmem>>, vector<8x128xbf16>
    %cst_10 = arith.constant dense<0.000000e+00> : vector<32x128xf32>
    %9 = tpu.matmul %7, %8, %cst_10 {dimension_numbers = #tpu.dot_dimension_numbers<[1], [0], [0], [1], [0, 0, 1, 1], [], []>} : vector<32x8xbf16>, vector<8x128xbf16>, vector<32x128xf32> -> vector<32x128xf32>
    %10 = arith.addf %5, %9 : vector<32x128xf32>
    %c0_11 = arith.constant 0 : index
    %c0_12 = arith.constant 0 : index
    %c2 = arith.constant 2 : index
    %c0_13 = arith.constant 0 : index
    %11 = vector.load %arg2[%c0_11, %c0_12, %c2, %c0_13] : memref<1x1x34x8xbf16, #tpu.memory_space<vmem>>, vector<1x1x32x8xbf16>
    %12 = vector.shape_cast %11 : vector<1x1x32x8xbf16> to vector<32x8xbf16>
    %c16 = arith.constant 16 : index
    %c0_14 = arith.constant 0 : index
    %13 = vector.load %arg5[%c16, %c0_14] : memref<72x128xbf16, #tpu.memory_space<vmem>>, vector<8x128xbf16>
    %cst_15 = arith.constant dense<0.000000e+00> : vector<32x128xf32>
    %14 = tpu.matmul %12, %13, %cst_15 {dimension_numbers = #tpu.dot_dimension_numbers<[1], [0], [0], [1], [0, 0, 1, 1], [], []>} : vector<32x8xbf16>, vector<8x128xbf16>, vector<32x128xf32> -> vector<32x128xf32>
    %15 = arith.addf %10, %14 : vector<32x128xf32>
    %c0_16 = arith.constant 0 : index
    %c0_17 = arith.constant 0 : index
    %c0_18 = arith.constant 0 : index
    %c0_19 = arith.constant 0 : index
    %16 = vector.load %arg3[%c0_16, %c0_17, %c0_18, %c0_19] : memref<1x1x34x8xbf16, #tpu.memory_space<vmem>>, vector<1x1x32x8xbf16>
    %17 = vector.shape_cast %16 : vector<1x1x32x8xbf16> to vector<32x8xbf16>
    %c24 = arith.constant 24 : index
    %c0_20 = arith.constant 0 : index
    %18 = vector.load %arg5[%c24, %c0_20] : memref<72x128xbf16, #tpu.memory_space<vmem>>, vector<8x128xbf16>
    %cst_21 = arith.constant dense<0.000000e+00> : vector<32x128xf32>
    %19 = tpu.matmul %17, %18, %cst_21 {dimension_numbers = #tpu.dot_dimension_numbers<[1], [0], [0], [1], [0, 0, 1, 1], [], []>} : vector<32x8xbf16>, vector<8x128xbf16>, vector<32x128xf32> -> vector<32x128xf32>
    %20 = arith.addf %15, %19 : vector<32x128xf32>
    %c0_22 = arith.constant 0 : index
    %c0_23 = arith.constant 0 : index
    %c1_24 = arith.constant 1 : index
    %c0_25 = arith.constant 0 : index
    %21 = vector.load %arg3[%c0_22, %c0_23, %c1_24, %c0_25] : memref<1x1x34x8xbf16, #tpu.memory_space<vmem>>, vector<1x1x32x8xbf16>
    %22 = vector.shape_cast %21 : vector<1x1x32x8xbf16> to vector<32x8xbf16>
    %c32 = arith.constant 32 : index
    %c0_26 = arith.constant 0 : index
    %23 = vector.load %arg5[%c32, %c0_26] : memref<72x128xbf16, #tpu.memory_space<vmem>>, vector<8x128xbf16>
    %cst_27 = arith.constant dense<0.000000e+00> : vector<32x128xf32>
    %24 = tpu.matmul %22, %23, %cst_27 {dimension_numbers = #tpu.dot_dimension_numbers<[1], [0], [0], [1], [0, 0, 1, 1], [], []>} : vector<32x8xbf16>, vector<8x128xbf16>, vector<32x128xf32> -> vector<32x128xf32>
    %25 = arith.addf %20, %24 : vector<32x128xf32>
    %c0_28 = arith.constant 0 : index
    %c0_29 = arith.constant 0 : index
    %c2_30 = arith.constant 2 : index
    %c0_31 = arith.constant 0 : index
    %26 = vector.load %arg3[%c0_28, %c0_29, %c2_30, %c0_31] : memref<1x1x34x8xbf16, #tpu.memory_space<vmem>>, vector<1x1x32x8xbf16>
    %27 = vector.shape_cast %26 : vector<1x1x32x8xbf16> to vector<32x8xbf16>
    %c40 = arith.constant 40 : index
    %c0_32 = arith.constant 0 : index
    %28 = vector.load %arg5[%c40, %c0_32] : memref<72x128xbf16, #tpu.memory_space<vmem>>, vector<8x128xbf16>
    %cst_33 = arith.constant dense<0.000000e+00> : vector<32x128xf32>
    %29 = tpu.matmul %27, %28, %cst_33 {dimension_numbers = #tpu.dot_dimension_numbers<[1], [0], [0], [1], [0, 0, 1, 1], [], []>} : vector<32x8xbf16>, vector<8x128xbf16>, vector<32x128xf32> -> vector<32x128xf32>
    %30 = arith.addf %25, %29 : vector<32x128xf32>
    %c0_34 = arith.constant 0 : index
    %c0_35 = arith.constant 0 : index
    %c0_36 = arith.constant 0 : index
    %c0_37 = arith.constant 0 : index
    %31 = vector.load %arg4[%c0_34, %c0_35, %c0_36, %c0_37] : memref<1x1x34x8xbf16, #tpu.memory_space<vmem>>, vector<1x1x32x8xbf16>
    %32 = vector.shape_cast %31 : vector<1x1x32x8xbf16> to vector<32x8xbf16>
    %c48 = arith.constant 48 : index
    %c0_38 = arith.constant 0 : index
    %33 = vector.load %arg5[%c48, %c0_38] : memref<72x128xbf16, #tpu.memory_space<vmem>>, vector<8x128xbf16>
    %cst_39 = arith.constant dense<0.000000e+00> : vector<32x128xf32>
    %34 = tpu.matmul %32, %33, %cst_39 {dimension_numbers = #tpu.dot_dimension_numbers<[1], [0], [0], [1], [0, 0, 1, 1], [], []>} : vector<32x8xbf16>, vector<8x128xbf16>, vector<32x128xf32> -> vector<32x128xf32>
    %35 = arith.addf %30, %34 : vector<32x128xf32>
    %c0_40 = arith.constant 0 : index
    %c0_41 = arith.constant 0 : index
    %c1_42 = arith.constant 1 : index
    %c0_43 = arith.constant 0 : index
    %36 = vector.load %arg4[%c0_40, %c0_41, %c1_42, %c0_43] : memref<1x1x34x8xbf16, #tpu.memory_space<vmem>>, vector<1x1x32x8xbf16>
    %37 = vector.shape_cast %36 : vector<1x1x32x8xbf16> to vector<32x8xbf16>
    %c56 = arith.constant 56 : index
    %c0_44 = arith.constant 0 : index
    %38 = vector.load %arg5[%c56, %c0_44] : memref<72x128xbf16, #tpu.memory_space<vmem>>, vector<8x128xbf16>
    %cst_45 = arith.constant dense<0.000000e+00> : vector<32x128xf32>
    %39 = tpu.matmul %37, %38, %cst_45 {dimension_numbers = #tpu.dot_dimension_numbers<[1], [0], [0], [1], [0, 0, 1, 1], [], []>} : vector<32x8xbf16>, vector<8x128xbf16>, vector<32x128xf32> -> vector<32x128xf32>
    %40 = arith.addf %35, %39 : vector<32x128xf32>
    %c0_46 = arith.constant 0 : index
    %c0_47 = arith.constant 0 : index
    %c2_48 = arith.constant 2 : index
    %c0_49 = arith.constant 0 : index
    %41 = vector.load %arg4[%c0_46, %c0_47, %c2_48, %c0_49] : memref<1x1x34x8xbf16, #tpu.memory_space<vmem>>, vector<1x1x32x8xbf16>
    %42 = vector.shape_cast %41 : vector<1x1x32x8xbf16> to vector<32x8xbf16>
    %c64 = arith.constant 64 : index
    %c0_50 = arith.constant 0 : index
    %43 = vector.load %arg5[%c64, %c0_50] : memref<72x128xbf16, #tpu.memory_space<vmem>>, vector<8x128xbf16>
    %cst_51 = arith.constant dense<0.000000e+00> : vector<32x128xf32>
    %44 = tpu.matmul %42, %43, %cst_51 {dimension_numbers = #tpu.dot_dimension_numbers<[1], [0], [0], [1], [0, 0, 1, 1], [], []>} : vector<32x8xbf16>, vector<8x128xbf16>, vector<32x128xf32> -> vector<32x128xf32>
    %45 = arith.addf %40, %44 : vector<32x128xf32>
    %c0_52 = arith.constant 0 : index
    %c0_53 = arith.constant 0 : index
    %46 = vector.load %arg6[%c0_52, %c0_53] : memref<1x128xf32, #tpu.memory_space<vmem>>, vector<1x128xf32>
    %47 = vector.broadcast %46 : vector<1x128xf32> to vector<32x128xf32>
    %48 = arith.addf %45, %47 : vector<32x128xf32>
    %c0_54 = arith.constant 0 : index
    %c0_55 = arith.constant 0 : index
    %c0_56 = arith.constant 0 : index
    %c0_57 = arith.constant 0 : index
    %49 = vector.load %arg7[%c0_54, %c0_55, %c0_56, %c0_57] : memref<1x1x32x128xf32, #tpu.memory_space<vmem>>, vector<1x1x32x128xf32>
    %50 = vector.shape_cast %49 : vector<1x1x32x128xf32> to vector<32x128xf32>
    %51 = vector.shape_cast %48 : vector<32x128xf32> to vector<1x1x32x128xf32>
    tpu.vector_store %arg7[%c0_54, %c0_55, %c0_56, %c0_57], %51 {strides = array<i32>} : memref<1x1x32x128xf32, #tpu.memory_space<vmem>>, vector<1x1x32x128xf32>,
    %cst_58 = arith.constant dense<0.000000e+00> : vector<128xf32>
    %52 = vector.multi_reduction <add>, %48, %cst_58 [0] : vector<32x128xf32> to vector<128xf32>
    %53 = vector.shape_cast %52 : vector<128xf32> to vector<1x128xf32>
    %c0_59 = arith.constant 0 : index
    %c0_60 = arith.constant 0 : index
    %c0_61 = arith.constant 0 : index
    %c0_62 = arith.constant 0 : index
    %54 = vector.load %arg8[%c0_59, %c0_60, %c0_61, %c0_62] : memref<1x1x1x128xf32, #tpu.memory_space<vmem>>, vector<1x1x1x128xf32>
    %55 = vector.shape_cast %54 : vector<1x1x1x128xf32> to vector<1x128xf32>
    %56 = vector.shape_cast %53 : vector<1x128xf32> to vector<1x1x1x128xf32>
    tpu.vector_store %arg8[%c0_59, %c0_60, %c0_61, %c0_62], %56 {strides = array<i32>} : memref<1x1x1x128xf32, #tpu.memory_space<vmem>>, vector<1x1x1x128xf32>,
    %57 = arith.mulf %48, %48 : vector<32x128xf32>
    %cst_63 = arith.constant dense<0.000000e+00> : vector<128xf32>
    %58 = vector.multi_reduction <add>, %57, %cst_63 [0] : vector<32x128xf32> to vector<128xf32>
    %59 = vector.shape_cast %58 : vector<128xf32> to vector<1x128xf32>
    %c0_64 = arith.constant 0 : index
    %c0_65 = arith.constant 0 : index
    %c0_66 = arith.constant 0 : index
    %c0_67 = arith.constant 0 : index
    %60 = vector.load %arg9[%c0_64, %c0_65, %c0_66, %c0_67] : memref<1x1x1x128xf32, #tpu.memory_space<vmem>>, vector<1x1x1x128xf32>
    %61 = vector.shape_cast %60 : vector<1x1x1x128xf32> to vector<1x128xf32>
    %62 = vector.shape_cast %59 : vector<1x128xf32> to vector<1x1x1x128xf32>
    tpu.vector_store %arg9[%c0_64, %c0_65, %c0_66, %c0_67], %62 {strides = array<i32>} : memref<1x1x1x128xf32, #tpu.memory_space<vmem>>, vector<1x1x1x128xf32>,
    return
  }
  func.func @transform_0(%arg0: i32, %arg1: i32) -> (i32, i32, i32, i32) {
    %c0_i32 = arith.constant 0 : i32
    %c0_i32_0 = arith.constant 0 : i32
    %c0_i32_1 = arith.constant 0 : i32
    return %arg0, %arg1, %c0_i32, %c0_i32_0 : i32, i32, i32, i32
  }
  func.func @transform_1(%arg0: i32, %arg1: i32) -> (i32, i32, i32, i32) {
    %c1_i32 = arith.constant 1 : i32
    %0 = arith.addi %arg1, %c1_i32 : i32
    %c0_i32 = arith.constant 0 : i32
    %c0_i32_0 = arith.constant 0 : i32
    %c0_i32_1 = arith.constant 0 : i32
    return %arg0, %0, %c0_i32, %c0_i32_0 : i32, i32, i32, i32
  }
  func.func @transform_2(%arg0: i32, %arg1: i32) -> (i32, i32, i32, i32) {
    %c2_i32 = arith.constant 2 : i32
    %0 = arith.addi %arg1, %c2_i32 : i32
    %c0_i32 = arith.constant 0 : i32
    %c0_i32_0 = arith.constant 0 : i32
    %c0_i32_1 = arith.constant 0 : i32
    return %arg0, %0, %c0_i32, %c0_i32_0 : i32, i32, i32, i32
  }
  func.func @transform_3(%arg0: i32, %arg1: i32) -> (i32, i32) {
    %c0_i32 = arith.constant 0 : i32
    %c0_i32_0 = arith.constant 0 : i32
    %c0_i32_1 = arith.constant 0 : i32
    return %c0_i32, %c0_i32_0 : i32, i32
  }
  func.func @transform_4(%arg0: i32, %arg1: i32) -> (i32, i32) {
    %c0_i32 = arith.constant 0 : i32
    %c0_i32_0 = arith.constant 0 : i32
    %c0_i32_1 = arith.constant 0 : i32
    return %c0_i32, %c0_i32_0 : i32, i32
  }
  func.func @transform_5(%arg0: i32, %arg1: i32) -> (i32, i32, i32, i32) {
    %c0_i32 = arith.constant 0 : i32
    %c0_i32_0 = arith.constant 0 : i32
    %c0_i32_1 = arith.constant 0 : i32
    return %arg0, %arg1, %c0_i32, %c0_i32_0 : i32, i32, i32, i32
  }
  func.func @transform_6(%arg0: i32, %arg1: i32) -> (i32, i32, i32, i32) {
    %c0_i32 = arith.constant 0 : i32
    %c0_i32_0 = arith.constant 0 : i32
    %c0_i32_1 = arith.constant 0 : i32
    return %arg0, %arg1, %c0_i32, %c0_i32_0 : i32, i32, i32, i32
  }
  func.func @transform_7(%arg0: i32, %arg1: i32) -> (i32, i32, i32, i32) {
    %c0_i32 = arith.constant 0 : i32
    %c0_i32_0 = arith.constant 0 : i32
    %c0_i32_1 = arith.constant 0 : i32
    return %arg0, %arg1, %c0_i32, %c0_i32_0 : i32, i32, i32, i32
  }
}

module attributes {stable_mosaic.version = 11 : i64} {
  func.func @_conv3x3_row_kernel(%arg0: i32, %arg1: i32, %arg2: memref<1x1x34x4xbf16, #tpu.memory_space<vmem>>, %arg3: memref<1x1x34x4xbf16, #tpu.memory_space<vmem>>, %arg4: memref<1x1x34x4xbf16, #tpu.memory_space<vmem>>, %arg5: memref<36x128xbf16, #tpu.memory_space<vmem>>, %arg6: memref<1x128xf32, #tpu.memory_space<vmem>>, %arg7: memref<1x1x32x128xf32, #tpu.memory_space<vmem>>, %arg8: memref<1x1x1x128xf32, #tpu.memory_space<vmem>>, %arg9: memref<1x1x1x128xf32, #tpu.memory_space<vmem>>) attributes {dimension_semantics = [#tpu.dimension_semantics<parallel>, #tpu.dimension_semantics<parallel>], iteration_bounds = array<i64: 2, 32>, scalar_prefetch = 0 : i64, scratch_operands = 0 : i64, tpu.core_type = #tpu.core_type<tc>, window_params = [{transform_indices = @transform_0, window_bounds = array<i64: 1, 1, 34, 4>}, {transform_indices = @transform_1, window_bounds = array<i64: 1, 1, 34, 4>}, {transform_indices = @transform_2, window_bounds = array<i64: 1, 1, 34, 4>}, {pipeline_mode = #tpu.pipeline_mode<synchronous>, transform_indices = @transform_3, window_bounds = array<i64: 36, 128>}, {pipeline_mode = #tpu.pipeline_mode<synchronous>, transform_indices = @transform_4, window_bounds = array<i64: 1, 128>}, {transform_indices = @transform_5, window_bounds = array<i64: 1, 1, 32, 128>}, {transform_indices = @transform_6, window_bounds = array<i64: 1, 1, 1, 128>}, {transform_indices = @transform_7, window_bounds = array<i64: 1, 1, 1, 128>}]} {
    %cst = arith.constant 0.000000e+00 : f32
    %0 = vector.broadcast %cst : f32 to vector<32x128xf32>
    %c0 = arith.constant 0 : index
    %c0_0 = arith.constant 0 : index
    %c0_1 = arith.constant 0 : index
    %c0_2 = arith.constant 0 : index
    %1 = vector.load %arg2[%c0, %c0_0, %c0_1, %c0_2] : memref<1x1x34x4xbf16, #tpu.memory_space<vmem>>, vector<1x1x32x4xbf16>
    %2 = vector.shape_cast %1 : vector<1x1x32x4xbf16> to vector<32x4xbf16>
    %c0_3 = arith.constant 0 : index
    %c0_4 = arith.constant 0 : index
    %3 = vector.load %arg5[%c0_3, %c0_4] : memref<36x128xbf16, #tpu.memory_space<vmem>>, vector<4x128xbf16>
    %cst_5 = arith.constant dense<0.000000e+00> : vector<32x128xf32>
    %4 = tpu.matmul %2, %3, %cst_5 {dimension_numbers = #tpu.dot_dimension_numbers<[1], [0], [0], [1], [0, 0, 1, 1], [], []>} : vector<32x4xbf16>, vector<4x128xbf16>, vector<32x128xf32> -> vector<32x128xf32>
    %5 = arith.addf %0, %4 : vector<32x128xf32>
    %c0_6 = arith.constant 0 : index
    %c0_7 = arith.constant 0 : index
    %c1 = arith.constant 1 : index
    %c0_8 = arith.constant 0 : index
    %6 = vector.load %arg2[%c0_6, %c0_7, %c1, %c0_8] : memref<1x1x34x4xbf16, #tpu.memory_space<vmem>>, vector<1x1x32x4xbf16>
    %7 = vector.shape_cast %6 : vector<1x1x32x4xbf16> to vector<32x4xbf16>
    %c4 = arith.constant 4 : index
    %c0_9 = arith.constant 0 : index
    %8 = vector.load %arg5[%c4, %c0_9] : memref<36x128xbf16, #tpu.memory_space<vmem>>, vector<4x128xbf16>
    %cst_10 = arith.constant dense<0.000000e+00> : vector<32x128xf32>
    %9 = tpu.matmul %7, %8, %cst_10 {dimension_numbers = #tpu.dot_dimension_numbers<[1], [0], [0], [1], [0, 0, 1, 1], [], []>} : vector<32x4xbf16>, vector<4x128xbf16>, vector<32x128xf32> -> vector<32x128xf32>
    %10 = arith.addf %5, %9 : vector<32x128xf32>
    %c0_11 = arith.constant 0 : index
    %c0_12 = arith.constant 0 : index
    %c2 = arith.constant 2 : index
    %c0_13 = arith.constant 0 : index
    %11 = vector.load %arg2[%c0_11, %c0_12, %c2, %c0_13] : memref<1x1x34x4xbf16, #tpu.memory_space<vmem>>, vector<1x1x32x4xbf16>
    %12 = vector.shape_cast %11 : vector<1x1x32x4xbf16> to vector<32x4xbf16>
    %c8 = arith.constant 8 : index
    %c0_14 = arith.constant 0 : index
    %13 = vector.load %arg5[%c8, %c0_14] : memref<36x128xbf16, #tpu.memory_space<vmem>>, vector<4x128xbf16>
    %cst_15 = arith.constant dense<0.000000e+00> : vector<32x128xf32>
    %14 = tpu.matmul %12, %13, %cst_15 {dimension_numbers = #tpu.dot_dimension_numbers<[1], [0], [0], [1], [0, 0, 1, 1], [], []>} : vector<32x4xbf16>, vector<4x128xbf16>, vector<32x128xf32> -> vector<32x128xf32>
    %15 = arith.addf %10, %14 : vector<32x128xf32>
    %c0_16 = arith.constant 0 : index
    %c0_17 = arith.constant 0 : index
    %c0_18 = arith.constant 0 : index
    %c0_19 = arith.constant 0 : index
    %16 = vector.load %arg3[%c0_16, %c0_17, %c0_18, %c0_19] : memref<1x1x34x4xbf16, #tpu.memory_space<vmem>>, vector<1x1x32x4xbf16>
    %17 = vector.shape_cast %16 : vector<1x1x32x4xbf16> to vector<32x4xbf16>
    %c12 = arith.constant 12 : index
    %c0_20 = arith.constant 0 : index
    %18 = vector.load %arg5[%c12, %c0_20] : memref<36x128xbf16, #tpu.memory_space<vmem>>, vector<4x128xbf16>
    %cst_21 = arith.constant dense<0.000000e+00> : vector<32x128xf32>
    %19 = tpu.matmul %17, %18, %cst_21 {dimension_numbers = #tpu.dot_dimension_numbers<[1], [0], [0], [1], [0, 0, 1, 1], [], []>} : vector<32x4xbf16>, vector<4x128xbf16>, vector<32x128xf32> -> vector<32x128xf32>
    %20 = arith.addf %15, %19 : vector<32x128xf32>
    %c0_22 = arith.constant 0 : index
    %c0_23 = arith.constant 0 : index
    %c1_24 = arith.constant 1 : index
    %c0_25 = arith.constant 0 : index
    %21 = vector.load %arg3[%c0_22, %c0_23, %c1_24, %c0_25] : memref<1x1x34x4xbf16, #tpu.memory_space<vmem>>, vector<1x1x32x4xbf16>
    %22 = vector.shape_cast %21 : vector<1x1x32x4xbf16> to vector<32x4xbf16>
    %c16 = arith.constant 16 : index
    %c0_26 = arith.constant 0 : index
    %23 = vector.load %arg5[%c16, %c0_26] : memref<36x128xbf16, #tpu.memory_space<vmem>>, vector<4x128xbf16>
    %cst_27 = arith.constant dense<0.000000e+00> : vector<32x128xf32>
    %24 = tpu.matmul %22, %23, %cst_27 {dimension_numbers = #tpu.dot_dimension_numbers<[1], [0], [0], [1], [0, 0, 1, 1], [], []>} : vector<32x4xbf16>, vector<4x128xbf16>, vector<32x128xf32> -> vector<32x128xf32>
    %25 = arith.addf %20, %24 : vector<32x128xf32>
    %c0_28 = arith.constant 0 : index
    %c0_29 = arith.constant 0 : index
    %c2_30 = arith.constant 2 : index
    %c0_31 = arith.constant 0 : index
    %26 = vector.load %arg3[%c0_28, %c0_29, %c2_30, %c0_31] : memref<1x1x34x4xbf16, #tpu.memory_space<vmem>>, vector<1x1x32x4xbf16>
    %27 = vector.shape_cast %26 : vector<1x1x32x4xbf16> to vector<32x4xbf16>
    %c20 = arith.constant 20 : index
    %c0_32 = arith.constant 0 : index
    %28 = vector.load %arg5[%c20, %c0_32] : memref<36x128xbf16, #tpu.memory_space<vmem>>, vector<4x128xbf16>
    %cst_33 = arith.constant dense<0.000000e+00> : vector<32x128xf32>
    %29 = tpu.matmul %27, %28, %cst_33 {dimension_numbers = #tpu.dot_dimension_numbers<[1], [0], [0], [1], [0, 0, 1, 1], [], []>} : vector<32x4xbf16>, vector<4x128xbf16>, vector<32x128xf32> -> vector<32x128xf32>
    %30 = arith.addf %25, %29 : vector<32x128xf32>
    %c0_34 = arith.constant 0 : index
    %c0_35 = arith.constant 0 : index
    %c0_36 = arith.constant 0 : index
    %c0_37 = arith.constant 0 : index
    %31 = vector.load %arg4[%c0_34, %c0_35, %c0_36, %c0_37] : memref<1x1x34x4xbf16, #tpu.memory_space<vmem>>, vector<1x1x32x4xbf16>
    %32 = vector.shape_cast %31 : vector<1x1x32x4xbf16> to vector<32x4xbf16>
    %c24 = arith.constant 24 : index
    %c0_38 = arith.constant 0 : index
    %33 = vector.load %arg5[%c24, %c0_38] : memref<36x128xbf16, #tpu.memory_space<vmem>>, vector<4x128xbf16>
    %cst_39 = arith.constant dense<0.000000e+00> : vector<32x128xf32>
    %34 = tpu.matmul %32, %33, %cst_39 {dimension_numbers = #tpu.dot_dimension_numbers<[1], [0], [0], [1], [0, 0, 1, 1], [], []>} : vector<32x4xbf16>, vector<4x128xbf16>, vector<32x128xf32> -> vector<32x128xf32>
    %35 = arith.addf %30, %34 : vector<32x128xf32>
    %c0_40 = arith.constant 0 : index
    %c0_41 = arith.constant 0 : index
    %c1_42 = arith.constant 1 : index
    %c0_43 = arith.constant 0 : index
    %36 = vector.load %arg4[%c0_40, %c0_41, %c1_42, %c0_43] : memref<1x1x34x4xbf16, #tpu.memory_space<vmem>>, vector<1x1x32x4xbf16>
    %37 = vector.shape_cast %36 : vector<1x1x32x4xbf16> to vector<32x4xbf16>
    %c28 = arith.constant 28 : index
    %c0_44 = arith.constant 0 : index
    %38 = vector.load %arg5[%c28, %c0_44] : memref<36x128xbf16, #tpu.memory_space<vmem>>, vector<4x128xbf16>
    %cst_45 = arith.constant dense<0.000000e+00> : vector<32x128xf32>
    %39 = tpu.matmul %37, %38, %cst_45 {dimension_numbers = #tpu.dot_dimension_numbers<[1], [0], [0], [1], [0, 0, 1, 1], [], []>} : vector<32x4xbf16>, vector<4x128xbf16>, vector<32x128xf32> -> vector<32x128xf32>
    %40 = arith.addf %35, %39 : vector<32x128xf32>
    %c0_46 = arith.constant 0 : index
    %c0_47 = arith.constant 0 : index
    %c2_48 = arith.constant 2 : index
    %c0_49 = arith.constant 0 : index
    %41 = vector.load %arg4[%c0_46, %c0_47, %c2_48, %c0_49] : memref<1x1x34x4xbf16, #tpu.memory_space<vmem>>, vector<1x1x32x4xbf16>
    %42 = vector.shape_cast %41 : vector<1x1x32x4xbf16> to vector<32x4xbf16>
    %c32 = arith.constant 32 : index
    %c0_50 = arith.constant 0 : index
    %43 = vector.load %arg5[%c32, %c0_50] : memref<36x128xbf16, #tpu.memory_space<vmem>>, vector<4x128xbf16>
    %cst_51 = arith.constant dense<0.000000e+00> : vector<32x128xf32>
    %44 = tpu.matmul %42, %43, %cst_51 {dimension_numbers = #tpu.dot_dimension_numbers<[1], [0], [0], [1], [0, 0, 1, 1], [], []>} : vector<32x4xbf16>, vector<4x128xbf16>, vector<32x128xf32> -> vector<32x128xf32>
    %45 = arith.addf %40, %44 : vector<32x128xf32>
    %c0_52 = arith.constant 0 : index
    %c0_53 = arith.constant 0 : index
    %46 = vector.load %arg6[%c0_52, %c0_53] : memref<1x128xf32, #tpu.memory_space<vmem>>, vector<1x128xf32>
    %47 = vector.broadcast %46 : vector<1x128xf32> to vector<32x128xf32>
    %48 = arith.addf %45, %47 : vector<32x128xf32>
    %c0_54 = arith.constant 0 : index
    %c0_55 = arith.constant 0 : index
    %c0_56 = arith.constant 0 : index
    %c0_57 = arith.constant 0 : index
    %49 = vector.load %arg7[%c0_54, %c0_55, %c0_56, %c0_57] : memref<1x1x32x128xf32, #tpu.memory_space<vmem>>, vector<1x1x32x128xf32>
    %50 = vector.shape_cast %49 : vector<1x1x32x128xf32> to vector<32x128xf32>
    %51 = vector.shape_cast %48 : vector<32x128xf32> to vector<1x1x32x128xf32>
    tpu.vector_store %arg7[%c0_54, %c0_55, %c0_56, %c0_57], %51 {strides = array<i32>} : memref<1x1x32x128xf32, #tpu.memory_space<vmem>>, vector<1x1x32x128xf32>,
    %cst_58 = arith.constant dense<0.000000e+00> : vector<128xf32>
    %52 = vector.multi_reduction <add>, %48, %cst_58 [0] : vector<32x128xf32> to vector<128xf32>
    %53 = vector.shape_cast %52 : vector<128xf32> to vector<1x128xf32>
    %c0_59 = arith.constant 0 : index
    %c0_60 = arith.constant 0 : index
    %c0_61 = arith.constant 0 : index
    %c0_62 = arith.constant 0 : index
    %54 = vector.load %arg8[%c0_59, %c0_60, %c0_61, %c0_62] : memref<1x1x1x128xf32, #tpu.memory_space<vmem>>, vector<1x1x1x128xf32>
    %55 = vector.shape_cast %54 : vector<1x1x1x128xf32> to vector<1x128xf32>
    %56 = vector.shape_cast %53 : vector<1x128xf32> to vector<1x1x1x128xf32>
    tpu.vector_store %arg8[%c0_59, %c0_60, %c0_61, %c0_62], %56 {strides = array<i32>} : memref<1x1x1x128xf32, #tpu.memory_space<vmem>>, vector<1x1x1x128xf32>,
    %57 = arith.mulf %48, %48 : vector<32x128xf32>
    %cst_63 = arith.constant dense<0.000000e+00> : vector<128xf32>
    %58 = vector.multi_reduction <add>, %57, %cst_63 [0] : vector<32x128xf32> to vector<128xf32>
    %59 = vector.shape_cast %58 : vector<128xf32> to vector<1x128xf32>
    %c0_64 = arith.constant 0 : index
    %c0_65 = arith.constant 0 : index
    %c0_66 = arith.constant 0 : index
    %c0_67 = arith.constant 0 : index
    %60 = vector.load %arg9[%c0_64, %c0_65, %c0_66, %c0_67] : memref<1x1x1x128xf32, #tpu.memory_space<vmem>>, vector<1x1x1x128xf32>
    %61 = vector.shape_cast %60 : vector<1x1x1x128xf32> to vector<1x128xf32>
    %62 = vector.shape_cast %59 : vector<1x128xf32> to vector<1x1x1x128xf32>
    tpu.vector_store %arg9[%c0_64, %c0_65, %c0_66, %c0_67], %62 {strides = array<i32>} : memref<1x1x1x128xf32, #tpu.memory_space<vmem>>, vector<1x1x1x128xf32>,
    return
  }
  func.func @transform_0(%arg0: i32, %arg1: i32) -> (i32, i32, i32, i32) {
    %c0_i32 = arith.constant 0 : i32
    %c0_i32_0 = arith.constant 0 : i32
    %c0_i32_1 = arith.constant 0 : i32
    return %arg0, %arg1, %c0_i32, %c0_i32_0 : i32, i32, i32, i32
  }
  func.func @transform_1(%arg0: i32, %arg1: i32) -> (i32, i32, i32, i32) {
    %c1_i32 = arith.constant 1 : i32
    %0 = arith.addi %arg1, %c1_i32 : i32
    %c0_i32 = arith.constant 0 : i32
    %c0_i32_0 = arith.constant 0 : i32
    %c0_i32_1 = arith.constant 0 : i32
    return %arg0, %0, %c0_i32, %c0_i32_0 : i32, i32, i32, i32
  }
  func.func @transform_2(%arg0: i32, %arg1: i32) -> (i32, i32, i32, i32) {
    %c2_i32 = arith.constant 2 : i32
    %0 = arith.addi %arg1, %c2_i32 : i32
    %c0_i32 = arith.constant 0 : i32
    %c0_i32_0 = arith.constant 0 : i32
    %c0_i32_1 = arith.constant 0 : i32
    return %arg0, %0, %c0_i32, %c0_i32_0 : i32, i32, i32, i32
  }
  func.func @transform_3(%arg0: i32, %arg1: i32) -> (i32, i32) {
    %c0_i32 = arith.constant 0 : i32
    %c0_i32_0 = arith.constant 0 : i32
    %c0_i32_1 = arith.constant 0 : i32
    return %c0_i32, %c0_i32_0 : i32, i32
  }
  func.func @transform_4(%arg0: i32, %arg1: i32) -> (i32, i32) {
    %c0_i32 = arith.constant 0 : i32
    %c0_i32_0 = arith.constant 0 : i32
    %c0_i32_1 = arith.constant 0 : i32
    return %c0_i32, %c0_i32_0 : i32, i32
  }
  func.func @transform_5(%arg0: i32, %arg1: i32) -> (i32, i32, i32, i32) {
    %c0_i32 = arith.constant 0 : i32
    %c0_i32_0 = arith.constant 0 : i32
    %c0_i32_1 = arith.constant 0 : i32
    return %arg0, %arg1, %c0_i32, %c0_i32_0 : i32, i32, i32, i32
  }
  func.func @transform_6(%arg0: i32, %arg1: i32) -> (i32, i32, i32, i32) {
    %c0_i32 = arith.constant 0 : i32
    %c0_i32_0 = arith.constant 0 : i32
    %c0_i32_1 = arith.constant 0 : i32
    return %arg0, %arg1, %c0_i32, %c0_i32_0 : i32, i32, i32, i32
  }
  func.func @transform_7(%arg0: i32, %arg1: i32) -> (i32, i32, i32, i32) {
    %c0_i32 = arith.constant 0 : i32
    %c0_i32_0 = arith.constant 0 : i32
    %c0_i32_1 = arith.constant 0 : i32
    return %arg0, %arg1, %c0_i32, %c0_i32_0 : i32, i32, i32, i32
  }
}

</mosaic_0001>

<bundles_post_ra>
// kernel: upblock2d_forward.3
= control target key start
LH: loop header
LB: loop body
LE: loop exit
PB: predicated region body
PF: predicated region fallthrough
CT: control target
= control target key end

     0   :  { %12 = vsyncpa [#allocation3], 0  ;;  %s1844_s0 = inlined_call_operand.vmem [shape: bf16[2,17,17,8], index: 0, kind: input, shape index: {}, may-alias: {0,1}]   ;;  %s1845_s1 = inlined_call_operand.vmem [shape: bf16[2,17,17,8], index: 1, kind: input, shape index: {}, may-alias: {0,1}]   ;;  %s1846_s2 = inlined_call_operand.hbm [shape: bf16[32,512], index: 2, kind: input, shape index: {}]   ;;  %s1847_s3 = inlined_call_operand.hbm [shape: f32[1,512], index: 3, kind: input, shape index: {}]   ;;  %s1848_s4 = inlined_call_operand.vmem [shape: f32[2,16,16,512], index: 4, kind: output, shape index: {0}]   ;;  %s1849_s5 = inlined_call_operand.vmem [shape: f32[2,16,1,512], index: 5, kind: output, shape index: {1}]   ;;  %s1850_s6 = inlined_call_operand.vmem [shape: f32[2,16,1,512], index: 6, kind: output, shape index: {2}]  }
   0x1   :  { %13 = vsyncpa [#allocation5], 0  ;;  %s1636_s21 = smov 0   ;;  %s1638_s22 = smov 0  }
   0x2   :  { %s1640_s23 = smov 0   ;;  %s1642_s24 = smov 0  }
   0x3   :  { %s1644_s25 = smov 0  }
   0x4 LB: > { %s1321_s26 = sadd.s32 4294967295, %s1593_s25   ;;  %s28_s27 = sadd.s32 1, %s1585_s23  ;;  %s1593_s25 = sphi %s1644_s25, %s19_s25   ;;  %s1589_s24 = sphi %s1642_s24, %s1862_s24   ;;  %s1585_s23 = sphi %s1640_s23, %s1861_s23   ;;  %s1581_s22 = sphi %s1638_s22, %s1860_s22   ;;  %s1577_s21 = sphi %s1636_s21, %s1859_s21  }
   0x5   : > { %p29_p0 = scmp.ge.s32.totalorder %s28_s27, 16  ;;  %s31_s28 = sadd.s32 1, %s1589_s24 }
   0x6   : > { %p1323_p1 = scmp.ge.s32.totalorder %s1593_s25, 1  ;;  %p220_p2 = scmp.lt.s32.totalorder %s1593_s25, 33 }
   0x7   : > { %s1864_s27 = smov (%p29_p0, %s28_s27), 0  ;;  %s1866_s28 = smov (!%p29_p0, %s31_s28), %s1589_s24 }
   0x8   : > { %p1669_p3 = pnand %p1323_p1, %p220_p2  ;;  %p33_p4 = scmp.ge.s32.totalorder %s1866_s28, 2 }
   0x9   : > { %p1673_p5 = scmp.eq.s32.totalorder %s1321_s26, 0  ;;  %s1595_s7 = smov [#allocation2]  }
   0xa   : > { %s1854_s29 = scalar_select %p1669_p3, 1, 0 }
   0xb   : > { %s1855_s30 = scalar_select %p1673_p5, 1, 0 }
   0xc   : > { %p1413_p6 = pneg %p1669_p3  ;;  %s1868_s28 = smov (%p33_p4, %s1866_s28), 0 }
   0xd   : > { %s232_s8 = sshll.u32 %s1595_s7, 4  ;;  %s1491_s12 = scalar_lea.hbm %s1846_s2, 1024  ;;  %s233_s8 = int_to_ptr.vmem [resolvable:$true] %s232_s8 }
   0xe   : > { %p1683_p7 = pnand %p1673_p5, %p1413_p6  ;;  %p1492_p8 = scmp.ne.s32.totalorder %s1846_s2, %s1491_s12 }
   0xf   : > { %p1498_p12 = scmp.lt.u32.totalorder %s1491_s12, %s1846_s2 }
  0x10   : > { %p1493_p9 = pneg %p1683_p7 }
  0x12   : > { %p1494_p10 = pnand %p1493_p9, %p1492_p8 }
  0x14   : > { %p1495_p11 = pneg %p1494_p10 }
  0x16   : > { %p1500_p13 = pnand %p1498_p12, %p1495_p11 }
  0x18   : > { %1503 = shalt.err (!%p1500_p13)
}
  0x19   : > { %s1504_s17 = scalar_lea.vmem %s233_s8, 1024  ;;  %p1512_p4 = scmp.lt.s32.totalorder %s233_s8, %s233_s8 }
  0x1a   : > { %p1505_p0 = scmp.ne.s32.totalorder %s233_s8, %s1504_s17  ;;  %p1513_p6 = scmp.lt.s32.totalorder %s1504_s17, %s1504_s17 }
  0x1c   : > { %p1507_p1 = pnand %p1505_p0, %p1493_p9  ;;  %p1514_p5 = por %p1513_p6, %p1512_p4 }
  0x1e   : > { %p1508_p2 = pneg %p1507_p1 }
  0x20   : > { %p1515_p3 = pnand %p1514_p5, %p1508_p2 }
  0x22   : > { %1518 = shalt.err (!%p1515_p3)
}
  0x23   : > { %s1596_s18 = smov 256   ;;  %s1597_s19 = smov 16  }
  0x24   : > { %1416 = dma.hbm_to_vmem [thread:$0]  (!%p1683_p7), %s1846_s2, 1024, %s233_s8, [#allocation3], %s1596_s18, %s1596_s18, %s1597_s19  }
  0x25   : > { %s1598_s7 = smov [#allocation4]   ;;  %s1519_s13 = scalar_lea.hbm %s1847_s3, 64 }
  0x26   : > { %s246_s10 = sshll.u32 %s1598_s7, 4  ;;  %p1520_p3 = scmp.ne.s32.totalorder %s1847_s3, %s1519_s13  ;;  %s247_s10 = int_to_ptr.vmem [resolvable:$true] %s246_s10 }
  0x27   : > { %p1526_p10 = scmp.lt.u32.totalorder %s1519_s13, %s1847_s3 }
  0x28   : > { %p1522_p5 = pnand %p1520_p3, %p1493_p9 }
  0x2a   : > { %p1523_p8 = pneg %p1522_p5 }
  0x2c   : > { %p1528_p11 = pnand %p1526_p10, %p1523_p8 }
  0x2e   : > { %1531 = shalt.err (!%p1528_p11)
}
  0x2f   : > { %s1532_s8 = scalar_lea.vmem %s247_s10, 64  ;;  %p1540_p1 = scmp.lt.s32.totalorder %s247_s10, %s247_s10 }
  0x30   : > { %p1533_p12 = scmp.ne.s32.totalorder %s247_s10, %s1532_s8  ;;  %p1541_p2 = scmp.lt.s32.totalorder %s1532_s8, %s1532_s8 }
  0x32   : > { %p1535_p13 = pnand %p1533_p12, %p1493_p9  ;;  %p1542_p4 = por %p1541_p2, %p1540_p1 }
  0x34   : > { %p1536_p0 = pneg %p1535_p13 }
  0x36   : > { %p1543_p6 = pnand %p1542_p4, %p1536_p0 }
  0x38   : > { %1546 = shalt.err (!%p1543_p6)
}
  0x39   : > { %1419 = dma.hbm_to_vmem [thread:$0]  (!%p1683_p7), %s1847_s3, 64, %s247_s10, [#allocation5]  }
  0x3a   : > { %p1857_p3 = scmp.ne.s32.totalorder %s1854_s29, 0 }
  0x3b   : > { %p1858_p5 = scmp.ne.s32.totalorder (!%p1857_p3), %s1855_s30, 0 }
  0x3c   : > { %285 = sbr.rel (%p1857_p3) target bundleno = 368 (0x170), region = 36 }
  0x43   : > { %1568 = dma.done.wait (%p1858_p5), [#allocation3], 1024  }
  0x44   : > { %1570 = vsyncadd (%p1858_p5), [#allocation3], 4294966272 }
  0x45   : > { %1572 = dma.done.wait (%p1858_p5), [#allocation5], 64  }
  0x46   : > { %1574 = vsyncadd (%p1858_p5), [#allocation5], 4294967232  ;;  %p353_p7 = scmp.lt.s32.totalorder %s1581_s22, 1  ;;  %p355_p9 = scmp.lt.s32.totalorder %s1577_s21, 16  ;;  %v1599_v0 = vmov 0   ;;  %v404_v1 = vld [vmem:[#allocation2 + $0x10] sm:$0xff]  ;;  %v924_v52 = vlaneseq }
  0x47   : > { %486 = vmatprep.mubr.bf16.mxu0 %v1599_v0  ;;  %529 = vmatprep.mubr.bf16.mxu1 %v1599_v0  ;;  %s362_s29 = sadd.s32 1, %s1577_s21  ;;  %vm441_vm0 = vcmask 1043456   ;;  %v405_v2 = vld [vmem:[#allocation2 + $0x18] sm:$0xff]  ;;  %v401_v3 = vld [vmem:[#allocation2] sm:$0xff]  ;;  %v1342_v4 = vcombine.high %v404_v1, %v404_v1  ;;  %v1341_v6 = vcombine.low %v404_v1, %v404_v1  ;;  %v402_v8 = vld [vmem:[#allocation2 + $0x8] sm:$0xff]  ;;  %vm437_vm2 = vcmask 64512  }
  0x48   : > { %s1870_s22 = smov (!%p353_p7, %s1581_s22), 1  ;;  %p365_p8 = scmp.lt.s32.totalorder %s362_s29, 16  ;;  %v1344_v5 = vcombine.high %v405_v2, %v405_v2  ;;  %v1343_v7 = vcombine.low %v405_v2, %v405_v2  ;;  %v1350_v9 = vcombine.high %v401_v3, %v401_v3  ;;  %v1352_v10 = vcombine.high %v402_v8, %v402_v8  ;;  %v652_v22 = vld [vmem:[#allocation2 + $0x20] sm:$0xff]  ;;  %v653_v23 = vld [vmem:[#allocation2 + $0x28] sm:$0xff]  ;;  %v781_v32 = vld [vmem:[#allocation2 + $0x30] sm:$0xff] }
  0x49   : > { %s356_s9 = scalar_select %p355_p9, %s1577_s21, 16  ;;  %1345 = vmatprep.subr.msk.bf16.mxu0 %vm441_vm0, %v1342_v4  ;;  %v443_v11 = vsel %vm441_vm0, %v1341_v6, 0  ;;  %vm414_vm1 = vsmask.f32 7424  ;;  %v1349_v18 = vcombine.low %v401_v3, %v401_v3  ;;  %v1351_v19 = vcombine.low %v402_v8, %v402_v8  ;;  %v782_v33 = vld [vmem:[#allocation2 + $0x38] sm:$0xff] }
  0x4a   : > { %s1403_s20 = smul.u32 51, %s1870_s22  ;;  %s1872_s29 = smov (!%p365_p8, %s362_s29), 16  ;;  %1347 = vmatprep.subr.msk.bf16.mxu1 %vm441_vm0, %v1344_v5  ;;  %v449_v12 = vsel %vm441_vm0, %v1343_v7, 0  ;;  %455 = vmatpush1.bf16.msra.mxu0 %v443_v11  ;;  %v1359_v28 = vcombine.high %v652_v22, %v652_v22  ;;  %v1361_v29 = vcombine.high %v653_v23, %v653_v23  ;;  %v1358_v30 = vcombine.low %v652_v22, %v652_v22  ;;  %v922_v56 = vld [vmem:[#allocation4] sm:$0xf] }
  0x4b   : > { %s1402_s30 = smul.u32 3, %s356_s9  ;;  %498 = vmatpush1.bf16.msra.mxu1 %v449_v12  ;;  %1353 = vmatprep.subr.msk.bf16.mxu0 %vm441_vm0, %v1350_v9  ;;  %v553_v25 = vsel %vm441_vm0, %v1349_v18, 0  ;;  %v559_v26 = vsel %vm441_vm0, %v1351_v19, 0  ;;  %v1360_v31 = vcombine.low %v653_v23, %v653_v23  ;;  %v1369_v36 = vcombine.high %v781_v32, %v781_v32  ;;  %p375_p10 = scmp.lt.s32.totalorder %s1577_s21, 15 }
  0x4c   : > { %s1404_s10 = smul.u32 3, %s1872_s29  ;;  %1355 = vmatprep.subr.msk.bf16.mxu1 %vm441_vm0, %v1352_v10  ;;  %v673_v34 = vsel %vm441_vm0, %v1358_v30, 0  ;;  %v1371_v37 = vcombine.high %v782_v33, %v782_v33  ;;  %v1368_v39 = vcombine.low %v781_v32, %v781_v32  ;;  %v1370_v40 = vcombine.low %v782_v33, %v782_v33  ;;  %s1333_s19 = sshll.u32 %s1870_s22, 7 }
  0x4d   : > { %s359_s26 = sadd.s32 %s1403_s20, %s1402_s30  ;;  %v679_v35 = vsel %vm441_vm0, %v1360_v31, 0  ;;  %s1874_s21 = smov (!%p375_p10, %s1577_s21), 15  ;;  %v925_v53 = vshrl.u32 %v924_v52, 7  ;;  %v1600_v57 = vmov 1966171168   ;;  %vm1019_vm3 = vcmp.lt.s32.totalorder %v924_v52, 512 }
  0x4e   : > { %s1330_s7 = sshll.u32 %s359_s26, 2  ;;  %s369_s14 = sadd.s32 %s1404_s10, %s1403_s20  ;;  %v817_v44 = vsel %vm441_vm0, %v1368_v39, 0  ;;  %v823_v45 = vsel %vm441_vm0, %v1370_v40, 0  ;;  %v995_v58 = vunpack.c.l.s4 %v1600_v57 }
  0x4f   : > { %s361_s13 = scalar_lea.vmem %s1844_s0, %s1330_s7  ;;  %s1331_s15 = sshll.u32 %s369_s14, 2  ;;  %v926_v54 = vsub.s32 0, %v925_v53  ;;  %v934_v55 = vsub.s32 2, %v925_v53  ;;  %v930_v59 = vsub.s32 1, %v925_v53  ;;  %v938_v60 = vsub.s32 3, %v925_v53 }
  0x50   : > { %v1476_v13 = vld [vmem:[%s361_s13] sm:$0xff]   ;;  %v1477_v14 = vld [vmem:[%s361_s13 + $0x8] ss:$0 sps:$4 sm:$0x11]   ;;  %s1761_s8 = scalar_lea.vmem %s1845_s1, %s1331_s15  ;;  %s1332_s18 = sshll.u32 %s1874_s21, 3  ;;  %v996_v63 = vunpack.c.0.s8 %v995_v58 }
  0x51   : > { %v416_v15 = vshrl.u32 %v1476_v13, 16  ;;  %v418_v16 = vshll.u32 %v1476_v13, 16  ;;  %v423_v17 = vshll.u32 %v1477_v14, 16  ;;  %v1489_v38 = vld [vmem:[%s1761_s8] sm:$0xff]   ;;  %s379_s29 = sadd.s32 %s1333_s19, %s1332_s18  ;;  %v927_v61 = vrot.slane %v922_v56, %v926_v54  ;;  %s1335_s7 = sshll.u32 %s1874_s21, 2 }
  0x52   : > { %v1486_v41 = vld [vmem:[%s1761_s8] sm:$0xff]   ;;  %v1490_v42 = vld [vmem:[%s1761_s8 + $0x8] ss:$0 sps:$4 sm:$0x11]   ;;  %v794_v43 = vshll.u32 %v1489_v38, 16  ;;  %v792_v46 = vshrl.u32 %v1489_v38, 16  ;;  %v935_v62 = vrot.slane %v922_v56, %v934_v55  ;;  %v939_v1 = vrot.slane %v922_v56, %v938_v60 }
  0x53   : > { %v420_v20 = vrot.slane %v418_v16, 1  ;;  %v425_v21 = vrot.slane %v423_v17, 1  ;;  %v799_v48 = vshll.u32 %v1490_v42, 16  ;;  %s1334_s9 = sshll.u32 %s379_s29, 3  ;;  %v1804_v8 = vsub.s32 %v996_v63, %v925_v53  ;;  %s1336_s10 = sshll.u32 %s1870_s22, 6 }
  0x54   : > { %v796_v47 = vrot.slane %v794_v43, 1  ;;  %s1802_s26 = scalar_lea.vmem %s1848_s4, %s1334_s9  ;;  %s388_s11 = sadd.s32 %s1336_s10, %s1335_s7 }
  0x55   : > { %v421_v24 = vor.u32 %v420_v20, %v416_v15  ;;  %v801_v50 = vrot.slane %v799_v48, 1  ;;  %s389_s12 = scalar_lea.vmem %s1849_s5, %s388_s11  ;;  %s397_s15 = scalar_lea.vmem %s1850_s6, %s388_s11 }
  0x56   : > { %v797_v49 = vor.u32 %v796_v47, %v792_v46 }
  0x57   : > { %v426_v27 = vsel %vm414_vm1, %v421_v24, %v425_v21 }
  0x58   : > { %1346 = vmatmul.mubr.msk.bf16.vlgmr.msra.gmra.mrb[0].mxu0 %vm437_vm2, %v426_v27  ;;  %1348 = vmatmul.mubr.msk.bf16.vlgmr.msra.gmra.mrb[0].mxu1 %vm437_vm2, %v426_v27  ;;  %v802_v51 = vsel %vm414_vm1, %v797_v49, %v801_v50 }
  0x59   : > { %565 = vmatpush1.bf16.msra.mxu0 %v553_v25  ;;  %608 = vmatpush1.bf16.msra.mxu1 %v559_v26 }
  0x5a   : > { %596 = vmatprep.mubr.bf16.mxu0 %v1599_v0  ;;  %639 = vmatprep.mubr.bf16.mxu1 %v1599_v0 }
  0x5b   : > { %1362 = vmatprep.subr.msk.bf16.mxu0 %vm441_vm0, %v1359_v28  ;;  %1364 = vmatprep.subr.msk.bf16.mxu1 %vm441_vm0, %v1361_v29 }
  0x64   : > { %1354 = vmatmul.mubr.msk.bf16.vlgmr.msra.gmra.mrb[0].mxu0 %vm437_vm2, %v1476_v13  ;;  %1356 = vmatmul.mubr.msk.bf16.vlgmr.msra.gmra.mrb[0].mxu1 %vm437_vm2, %v1476_v13 }
  0x65   : > { %685 = vmatpush1.bf16.msra.mxu0 %v673_v34  ;;  %728 = vmatpush1.bf16.msra.mxu1 %v679_v35 }
  0x66   : > { %716 = vmatprep.mubr.bf16.mxu0 %v1599_v0  ;;  %759 = vmatprep.mubr.bf16.mxu1 %v1599_v0 }
  0x67   : > { %1372 = vmatprep.subr.msk.bf16.mxu0 %vm441_vm0, %v1369_v36  ;;  %1374 = vmatprep.subr.msk.bf16.mxu1 %vm441_vm0, %v1371_v37 }
  0x70   : > { %1363 = vmatmul.mubr.msk.bf16.vlgmr.msra.gmra.mrb[0].mxu0 %vm437_vm2, %v1486_v41  ;;  %1365 = vmatmul.mubr.msk.bf16.vlgmr.msra.gmra.mrb[0].mxu1 %vm437_vm2, %v1486_v41 }
  0x71   : > { %829 = vmatpush1.bf16.msra.mxu0 %v817_v44  ;;  %872 = vmatpush1.bf16.msra.mxu1 %v823_v45 }
  0x72   : > { %860 = vmatprep.mubr.bf16.mxu0 %v1599_v0  ;;  %903 = vmatprep.mubr.bf16.mxu1 %v1599_v0  ;;  %v931_v0 = vrot.slane %v922_v56, %v930_v59 }
  0x7c   : > { %1373 = vmatmul.mubr.msk.bf16.vlgmr.msra.gmra.mrb[0].mxu0 %vm437_vm2, %v802_v51  ;;  %1375 = vmatmul.mubr.msk.bf16.vlgmr.msra.gmra.mrb[0].mxu1 %vm437_vm2, %v802_v51 }
 0x14f   : > { %v862_v2 = vpop.f32.mrb[0].mxu0  ;;  %v905_v3 = vpop.f32.mrb[0].mxu1 }
 0x150   : > { %v944_v4 = vadd.f32 %v927_v61, %v862_v2  ;;  %v946_v5 = vadd.f32 %v935_v62, %v905_v3  ;;  %v864_v6 = vpop.f32.mrb[1].mxu0  ;;  %v907_v7 = vpop.f32.mrb[1].mxu1 }
 0x151   : > { %v945_v9 = vadd.f32 %v931_v0, %v864_v6  ;;  %v947_v10 = vadd.f32 %v939_v1, %v907_v7  ;;  %v866_v11 = vpop.f32.mrb[2].mxu0  ;;  %v909_v12 = vpop.f32.mrb[2].mxu1 }
 0x152   : > { %952 = vst [vmem:[%s1802_s26] sm:$0xff] %v944_v4  ;;  %v1022_v13 = vmul.f32 %v944_v4, %v944_v4  ;;  %954 = vst [vmem:[%s1802_s26 + $0x10] sm:$0xff] %v946_v5  ;;  %v1024_v14 = vmul.f32 %v946_v5, %v946_v5  ;;  %v948_v15 = vadd.f32 %v927_v61, %v866_v11  ;;  %v868_v17 = vpop.f32.mrb[3].mxu0  ;;  %v911_v18 = vpop.f32.mrb[3].mxu1 }
 0x153   : > { %v950_v16 = vadd.f32 %v935_v62, %v909_v12  ;;  %953 = vst [vmem:[%s1802_s26 + $0x8] sm:$0xff] %v945_v9  ;;  %v1023_v19 = vmul.f32 %v945_v9, %v945_v9  ;;  %955 = vst [vmem:[%s1802_s26 + $0x18] sm:$0xff] %v947_v10  ;;  %v1025_v20 = vmul.f32 %v947_v10, %v947_v10 }
 0x154   : > { %v949_v21 = vadd.f32 %v931_v0, %v868_v17  ;;  %v951_v22 = vadd.f32 %v939_v1, %v911_v18  ;;  %956 = vst [vmem:[%s1802_s26 + $0x20] sm:$0xff] %v948_v15  ;;  %v960_v23 = vadd.f32 %v948_v15, %v944_v4  ;;  %v1026_v24 = vmul.f32 %v948_v15, %v948_v15 }
 0x155   : > { %958 = vst [vmem:[%s1802_s26 + $0x30] sm:$0xff] %v950_v16  ;;  %v974_v25 = vadd.f32 %v950_v16, %v946_v5  ;;  %v1028_v26 = vmul.f32 %v950_v16, %v950_v16 }
 0x156   : > { %957 = vst [vmem:[%s1802_s26 + $0x28] sm:$0xff] %v949_v21  ;;  %v967_v27 = vadd.f32 %v949_v21, %v945_v9  ;;  %v1027_v28 = vmul.f32 %v949_v21, %v949_v21  ;;  %959 = vst [vmem:[%s1802_s26 + $0x38] sm:$0xff] %v951_v22  ;;  %v981_v29 = vadd.f32 %v951_v22, %v947_v10  ;;  %v961_v31 = vrot.slane %v960_v23, 4 }
 0x157   : > { %v1029_v30 = vmul.f32 %v951_v22, %v951_v22  ;;  %v1030_v32 = vadd.f32 %v1026_v24, %v1022_v13  ;;  %v975_v33 = vrot.slane %v974_v25, 4  ;;  %v1044_v34 = vadd.f32 %v1028_v26, %v1024_v14 }
 0x158   : > { %v968_v35 = vrot.slane %v967_v27, 4  ;;  %v1037_v36 = vadd.f32 %v1027_v28, %v1023_v19  ;;  %v982_v37 = vrot.slane %v981_v29, 4  ;;  %v962_v39 = vadd.f32 %v961_v31, %v960_v23 }
 0x159   : > { %v1051_v38 = vadd.f32 %v1029_v30, %v1025_v20  ;;  %v1031_v40 = vrot.slane %v1030_v32, 4  ;;  %v976_v41 = vadd.f32 %v975_v33, %v974_v25  ;;  %v1045_v42 = vrot.slane %v1044_v34, 4 }
 0x15a   : > { %v969_v43 = vadd.f32 %v968_v35, %v967_v27  ;;  %v1038_v44 = vrot.slane %v1037_v36, 4  ;;  %v983_v45 = vadd.f32 %v982_v37, %v981_v29  ;;  %v963_v47 = vrot.slane %v962_v39, 2 }
 0x15b   : > { %v1052_v46 = vrot.slane %v1051_v38, 4  ;;  %v1032_v48 = vadd.f32 %v1031_v40, %v1030_v32  ;;  %v977_v49 = vrot.slane %v976_v41, 2  ;;  %v1046_v50 = vadd.f32 %v1045_v42, %v1044_v34 }
 0x15c   : > { %v970_v51 = vrot.slane %v969_v43, 2  ;;  %v1039_v53 = vadd.f32 %v1038_v44, %v1037_v36  ;;  %v984_v54 = vrot.slane %v983_v45, 2  ;;  %v964_v56 = vadd.f32 %v963_v47, %v962_v39 }
 0x15d   : > { %v1053_v55 = vadd.f32 %v1052_v46, %v1051_v38  ;;  %v1033_v57 = vrot.slane %v1032_v48, 2  ;;  %v978_v58 = vadd.f32 %v977_v49, %v976_v41  ;;  %v1047_v59 = vrot.slane %v1046_v50, 2 }
 0x15e   : > { %v971_v60 = vadd.f32 %v970_v51, %v969_v43  ;;  %v1040_v61 = vrot.slane %v1039_v53, 2  ;;  %v985_v62 = vadd.f32 %v984_v54, %v983_v45  ;;  %v965_v0 = vrot.slane %v964_v56, 1 }
 0x15f   : > { %v1054_v63 = vrot.slane %v1053_v55, 2  ;;  %v1034_v1 = vadd.f32 %v1033_v57, %v1032_v48  ;;  %v979_v2 = vrot.slane %v978_v58, 1  ;;  %v1048_v3 = vadd.f32 %v1047_v59, %v1046_v50 }
 0x160   : > { %v972_v4 = vrot.slane %v971_v60, 1  ;;  %v1041_v5 = vadd.f32 %v1040_v61, %v1039_v53  ;;  %v986_v6 = vrot.slane %v985_v62, 1  ;;  %v966_v9 = vadd.f32 %v965_v0, %v964_v56 }
 0x161   : > { %v1055_v7 = vadd.f32 %v1054_v63, %v1053_v55  ;;  %v1035_v10 = vrot.slane %v1034_v1, 1  ;;  %v980_v11 = vadd.f32 %v979_v2, %v978_v58  ;;  %v1049_v12 = vrot.slane %v1048_v3, 1 }
 0x162   : > { %v973_v13 = vadd.f32 %v972_v4, %v971_v60  ;;  %v1042_v14 = vrot.slane %v1041_v5, 1  ;;  %v987_v15 = vadd.f32 %v986_v6, %v985_v62 }
 0x163   : > { %v1056_v16 = vrot.slane %v1055_v7, 1  ;;  %v1036_v17 = vadd.f32 %v1035_v10, %v1034_v1  ;;  %v1050_v18 = vadd.f32 %v1049_v12, %v1048_v3 }
 0x164   : > { %v992_v19 = vcombine.low %v966_v9, %v973_v13  ;;  %v1043_v20 = vadd.f32 %v1042_v14, %v1041_v5  ;;  %v993_v21 = vcombine.low %v980_v11, %v987_v15 }
 0x165   : > { %v1057_v22 = vadd.f32 %v1056_v16, %v1055_v7 }
 0x166   : > { %v1000_v23 = vrot.slane %v992_v19, %v1804_v8  ;;  %v1062_v24 = vcombine.low %v1036_v17, %v1043_v20  ;;  %v1007_v25 = vrot.slane %v993_v21, %v1804_v8 }
 0x167   : > { %v1063_v26 = vcombine.low %v1050_v18, %v1057_v22 }
 0x168   : > { %v1070_v27 = vrot.slane %v1062_v24, %v1804_v8  ;;  %v1008_v28 = vcombine.low %v1000_v23, %v1007_v25 }
 0x169   : > { %v1077_v29 = vrot.slane %v1063_v26, %v1804_v8 }
 0x16a   : > { %v1015_v30 = vrot.slane %v1008_v28, %v1804_v8 }
 0x16b   : > { %v1078_v31 = vcombine.low %v1070_v27, %v1077_v29 }
 0x16c   : > { %1021 = vst.msk [vmem:[%s389_s12] sm:$0xf] %vm1019_vm3, %v1015_v30 }
 0x16d   : > { %v1085_v32 = vrot.slane %v1078_v31, %v1804_v8 }
 0x16f   : > { %1087 = vst.msk [vmem:[%s397_s15] sm:$0xf] %vm1019_vm3, %v1085_v32 }
 0x170 PF: > { %s19_s25 = sadd.s32 1, %s1593_s25   ;;  %s1859_s21 = smov %s1585_s23 }
 0x171   : > { %p16_p11 = scmp.ge.s32.totalorder %s19_s25, 34   ;;  %s1860_s22 = smov %s1589_s24 }
 0x172   : > { %s1861_s23 = smov %s1864_s27  ;;  %s1862_s24 = smov %s1868_s28 }
 0x173   :  { %18 = sbr.rel (!%p16_p11) target bundleno = 4 (0x4), region = 102 }
 0x17a   :  { %1161 = vsyncpa [#allocation3], 1 }
 0x17b   :  { %1163 = vsyncpa [#allocation3 + $0x1], 1 }
 0x17c   :  { %1164 = vsyncpa [#allocation5], 1 }

// kernel: upblock2d_forward.4
= control target key start
LH: loop header
LB: loop body
LE: loop exit
PB: predicated region body
PF: predicated region fallthrough
CT: control target
= control target key end

     0   :  { %s1735_s24 = smov 0   ;;  %s1737_s25 = smov 0   ;;  %s1946_s0 = inlined_call_operand.vmem [shape: bf16[2,34,34,8], index: 0, kind: input, shape index: {}, may-alias: {0,1,2}]   ;;  %s1947_s1 = inlined_call_operand.vmem [shape: bf16[2,34,34,8], index: 1, kind: input, shape index: {}, may-alias: {0,1,2}]   ;;  %s1948_s2 = inlined_call_operand.vmem [shape: bf16[2,34,34,8], index: 2, kind: input, shape index: {}, may-alias: {0,1,2}]   ;;  %s1949_s3 = inlined_call_operand.vmem [shape: bf16[72,128], index: 3, kind: input, shape index: {}]   ;;  %s1950_s4 = inlined_call_operand.vmem [shape: f32[1,128], index: 4, kind: input, shape index: {}]   ;;  %s1951_s5 = inlined_call_operand.vmem [shape: f32[2,32,32,128], index: 5, kind: output, shape index: {0}]   ;;  %s1952_s6 = inlined_call_operand.vmem [shape: f32[2,32,1,128], index: 6, kind: output, shape index: {1}]   ;;  %s1953_s7 = inlined_call_operand.vmem [shape: f32[2,32,1,128], index: 7, kind: output, shape index: {2}]  }
   0x1   :  { %s1739_s26 = smov 0   ;;  %s1741_s27 = smov 0  }
   0x2   :  { %s1743_s28 = smov 0  }
   0x3 LB: > { %s27_s29 = sadd.s32 1, %s1685_s26  ;;  %s30_s30 = sadd.s32 1, %s1689_s27  ;;  %s1693_s28 = sphi %s1743_s28, %s18_s28   ;;  %s1689_s27 = sphi %s1741_s27, %s1957_s27   ;;  %s1685_s26 = sphi %s1739_s26, %s1956_s26   ;;  %s1681_s25 = sphi %s1737_s25, %s1955_s25   ;;  %s1677_s24 = sphi %s1735_s24, %s1954_s24  }
   0x4   : > { %p28_p0 = scmp.ge.s32.totalorder %s27_s29, 32  ;;  %p1427_p1 = scmp.ge.s32.totalorder %s1693_s28, 1 }
   0x5   : > { %p306_p2 = scmp.lt.s32.totalorder %s1693_s28, 65 }
   0x6   : > { %s1959_s29 = smov (%p28_p0, %s27_s29), 0  ;;  %s1961_s30 = smov (!%p28_p0, %s30_s30), %s1689_s27 }
   0x7   : > { %p307_p3 = pnand %p1427_p1, %p306_p2  ;;  %p32_p4 = scmp.ge.s32.totalorder %s1961_s30, 2 }
   0x8   : > { %v441_v0 = vld [vmem:[%s1949_s3 + $0x4] sm:$0xf] (!%p307_p3)  ;;  %vm483_vm0 = vcmask (!%p307_p3), 1043456   ;;  %v747_v1 = vld [vmem:[%s1949_s3 + $0x10] sm:$0xf] (!%p307_p3)  ;;  %p380_p5 = scmp.lt.s32.totalorder (!%p307_p3), %s1681_s25, 1 }
   0x9   : > { %s1963_s30 = smov (%p32_p4, %s1961_s30), 0  ;;  %310 = sbr.rel (%p307_p3) target bundleno = 326 (0x146), region = 40 }
   0xa   : > { %1586 = vmatprep.subr.msk.bf16.mxu1 (!%p307_p3), %vm483_vm0, %v441_v0  ;;  %1590 = vmatprep.subr.msk.bf16.mxu0 (!%p307_p3), %vm483_vm0, %v747_v1  ;;  %v485_v2 = vsel (!%p307_p3), %vm483_vm0, %v441_v0, 0  ;;  %v788_v3 = vsel (!%p307_p3), %vm483_vm0, %v747_v1, 0  ;;  %p382_p6 = scmp.lt.s32.totalorder (!%p307_p3), %s1677_s24, 33  ;;  %s389_s12 = sadd.s32 (!%p307_p3), 1, %s1677_s24  ;;  %v1784_v4 = vld [vmem:[%s1949_s3 + $0x14] sm:$0xf] (!%p307_p3) }
   0xb   : > { %1501 = vmatpush3.bf16.msra.mxu1 (!%p307_p3), %v485_v2  ;;  %1525 = vmatpush3.bf16.msra.mxu0 (!%p307_p3), %v788_v3  ;;  %v439_v5 = vld [vmem:[%s1949_s3] sm:$0xf] (!%p307_p3)  ;;  %p392_p7 = scmp.lt.s32.totalorder (!%p307_p3), %s389_s12, 33  ;;  %s400_s20 = sadd.s32 (!%p307_p3), 2, %s1677_s24  ;;  %vm455_vm1 = vsmask.f32 (!%p307_p3), 7424 }
   0xc   : > { %1591 = vmatprep.subr.msk.bf16.mxu0 (!%p307_p3), %vm483_vm0, %v1784_v4  ;;  %1587 = vmatprep.subr.msk.bf16.mxu1 (!%p307_p3), %vm483_vm0, %v439_v5  ;;  %p403_p8 = scmp.lt.s32.totalorder (!%p307_p3), %s400_s20, 33  ;;  %vm476_vm2 = vcmask (!%p307_p3), 64512   ;;  %v541_v19 = vsel (!%p307_p3), %vm483_vm0, %v439_v5, 0  ;;  %v593_v33 = vld [vmem:[%s1949_s3 + $0x8] sm:$0xf] (!%p307_p3)  ;;  %vm597_vm3 = vcmask (!%p307_p3), 1046528  }
   0xd   : > { %v860_v47 = vsel (!%p307_p3), %vm483_vm0, %v1784_v4, 0  ;;  %v919_v50 = vld [vmem:[%s1949_s3 + $0x18] sm:$0xf] (!%p307_p3)  ;;  %v610_v56 = vsel (!%p307_p3), %vm483_vm0, %v593_v33, 0  ;;  %v669_v59 = vld [vmem:[%s1949_s3 + $0xc] sm:$0xf] (!%p307_p3) }
   0xe   : > { %v937_v62 = vsel (!%p307_p3), %vm483_vm0, %v919_v50, 0  ;;  %v997_v1 = vld [vmem:[%s1949_s3 + $0x1c] sm:$0xf] (!%p307_p3)  ;;  %p413_p9 = scmp.lt.s32.totalorder (!%p307_p3), %s1677_s24, 31 }
  0x10   : > { %s1965_s25 = smov (!%p380_p5, %s1681_s25), 1  ;;  %s1967_s12 = smov (!%p392_p7, %s389_s12), 33 }
  0x11   : > { %s383_s17 = scalar_select %p382_p6, %s1677_s24, 33 }
  0x12   : > { %s1794_s18 = smul.u32 170, %s1965_s25  ;;  %s1969_s20 = smov (!%p403_p8, %s400_s20), 33 }
  0x13   : > { %s1595_s19 = smul.u32 5, %s383_s17  ;;  %s1971_s24 = smov (!%p413_p9, %s1677_s24), 31 }
  0x14   : > { %s1597_s23 = smul.u32 5, %s1967_s12  ;;  %s1434_s9 = sshll.u32 %s1965_s25, 5 }
  0x15   : > { %s386_s21 = sadd.s32 %s1794_s18, %s1595_s19  ;;  %s1598_s16 = smul.u32 5, %s1969_s20 }
  0x16   : > { %s1428_s22 = sshll.u32 %s386_s21, 2  ;;  %s396_s11 = sadd.s32 %s1597_s23, %s1794_s18 }
  0x17   : > { %s1801_s10 = scalar_lea.vmem %s1946_s0, %s1428_s22  ;;  %s1429_s13 = sshll.u32 %s396_s11, 2 }
  0x18   : > { %v435_v6 = vld [vmem:[%s1801_s10] sm:$0xf]  ;;  %v1806_v7 = vld [vmem:[%s1801_s10 + $0x4] sm:$0xf]  ;;  %v1810_v9 = vld [vmem:[%s1801_s10 + $0x8] sm:$0xff]   ;;  %s1815_s15 = scalar_lea.vmem %s1947_s1, %s1429_s13  ;;  %s407_s17 = sadd.s32 %s1598_s16, %s1794_s18 }
  0x19   : > { %v1436_v8 = vcombine.low %v435_v6, %v1806_v7  ;;  %v1818_v10 = vld [vmem:[%s1801_s10 + $0x10] ss:$0 sps:$4 sm:$0x11]   ;;  %v464_v13 = vshll.u32 %v1810_v9, 16  ;;  %v468_v14 = vshrl.u32 %v1810_v9, 16  ;;  %v1823_v15 = vld [vmem:[%s1815_s15 + $0x8] sm:$0xff]  }
  0x1a   : > { %v472_v16 = vshll.u32 %v1818_v10, 16  ;;  %v742_v17 = vld [vmem:[%s1815_s15] sm:$0xf]  ;;  %v743_v18 = vld [vmem:[%s1815_s15 + $0x4] sm:$0xf]  ;;  %v769_v23 = vshll.u32 %v1823_v15, 16 }
  0x1b   : > { %v457_v11 = vshrl.u32 %v1436_v8, 16  ;;  %v459_v12 = vshll.u32 %v1436_v8, 16  ;;  %v466_v21 = vrot.slane %v464_v13, 1  ;;  %v1450_v22 = vcombine.low %v742_v17, %v743_v18  ;;  %v1644_v30 = vld [vmem:[%s1815_s15 + $0x10] ss:$0 sps:$4 sm:$0x11]  }
  0x1c   : > { %v474_v24 = vrot.slane %v472_v16, 1  ;;  %v773_v25 = vshrl.u32 %v1823_v15, 16  ;;  %s1430_s19 = sshll.u32 %s407_s17, 2  ;;  %v771_v31 = vrot.slane %v769_v23, 1  ;;  %v843_v32 = vld [vmem:[%s1815_s15] sm:$0xe] }
  0x1d   : > { %v461_v20 = vrot.slane %v459_v12, 1  ;;  %v470_v27 = vor.u32 %v468_v14, %v466_v21  ;;  %v762_v28 = vshrl.u32 %v1450_v22, 16  ;;  %v764_v29 = vshll.u32 %v1450_v22, 16  ;;  %v592_v34 = vld [vmem:[%s1801_s10] sm:$0xe]  ;;  %s1841_s8 = scalar_lea.vmem %s1948_s2, %s1430_s19  ;;  %s1432_s17 = sshll.u32 %s1965_s25, 7 }
  0x1e   : > { %v777_v38 = vshll.u32 %v1644_v30, 16  ;;  %v775_v39 = vor.u32 %v773_v25, %v771_v31  ;;  %v1455_v40 = vcombine.low %v843_v32, %v743_v18  ;;  %v849_v41 = vrot.slane %v1823_v15, 1  ;;  %v992_v53 = vld [vmem:[%s1841_s8] sm:$0xf]  ;;  %v993_v54 = vld [vmem:[%s1841_s8 + $0x4] sm:$0xf]  ;;  %s425_s10 = sadd.s32 %s1434_s9, %s1971_s24 }
  0x1f   : > { %v462_v26 = vor.u32 %v461_v20, %v457_v11  ;;  %v475_v36 = vsel %vm455_vm1, %v470_v27, %v474_v24  ;;  %v766_v37 = vrot.slane %v764_v29, 1  ;;  %v1443_v48 = vcombine.low %v592_v34, %v1806_v7  ;;  %v1647_v61 = vld [vmem:[%s1841_s8] sm:$0xff]   ;;  %v1652_v63 = vld [vmem:[%s1841_s8 + $0x8] sm:$0xff]   ;;  %s426_s12 = scalar_lea.vmem %s1952_s6, %s425_s10 }
  0x20   : > { %v779_v43 = vrot.slane %v777_v38, 1  ;;  %v848_v44 = vrot.slane %v1455_v40, 1  ;;  %v599_v52 = vrot.slane %v1810_v9, 1  ;;  %v851_v55 = vrot.slane %v1644_v30, 1  ;;  %v1649_v7 = vld [vmem:[%s1815_s15] sm:$0xff]   ;;  %v1648_v12 = vld [vmem:[%s1841_s8 + $0x8] sm:$0xff]  }
  0x21   : > { %v467_v35 = vsel %vm455_vm1, %v462_v26, %v466_v21  ;;  %v767_v42 = vor.u32 %v766_v37, %v762_v28  ;;  %v598_v51 = vrot.slane %v1443_v48, 1  ;;  %v1462_v58 = vcombine.low %v992_v53, %v993_v54  ;;  %v1094_v15 = vld [vmem:[%s1949_s3 + $0x20] sm:$0xf]  ;;  %v1650_v20 = vld [vmem:[%s1815_s15 + $0x8] sm:$0xff]   ;;  %s1431_s15 = sshll.u32 %s1971_s24, 2 }
  0x22   : > { %1502 = vmatprep.mubr.msk.bf16.mxu1 %vm476_vm2, %v467_v35  ;;  %v780_v46 = vsel %vm455_vm1, %v775_v39, %v779_v43  ;;  %v850_v49 = vsel %vm597_vm3, %v848_v44, %v849_v41  ;;  %v852_v60 = vsel %vm597_vm3, %v849_v41, %v851_v55  ;;  %v601_v2 = vrot.slane %v1818_v10, 1  ;;  %v1653_v10 = vld [vmem:[%s1841_s8 + $0x10] ss:$0 sps:$4 sm:$0x11]   ;;  %v1093_v16 = vld [vmem:[%s1841_s8] sm:$0xe]  ;;  %s417_s19 = sadd.s32 %s1432_s17, %s1431_s15  ;;  %s433_s15 = scalar_lea.vmem %s1953_s7, %s425_s10 }
  0x23   : > { %1503 = vmatmul.mubr.msk.bf16.vlgmr.msra.gmra.mrb[0].mxu1 %vm476_vm2, %v475_v36  ;;  %v772_v45 = vsel %vm455_vm1, %v767_v42, %v771_v31  ;;  %v600_v57 = vsel %vm597_vm3, %v598_v51, %v599_v52  ;;  %v1014_v0 = vshll.u32 %v1462_v58, 16  ;;  %v1012_v3 = vshrl.u32 %v1462_v58, 16  ;;  %s1433_s21 = sshll.u32 %s417_s19, 3  ;;  %v1470_v35 = vld [vmem:[%s1950_s4] ss:$0 sm:$0xff] }
  0x24   : > { %1507 = vmatpush3.bf16.msra.mxu1 %v541_v19  ;;  %1508 = vmatprep.mubr.msk.bf16.mxu1 %vm476_vm2, %v1436_v8  ;;  %v1019_v5 = vshll.u32 %v1652_v63, 16  ;;  %v602_v6 = vsel %vm597_vm3, %v599_v52, %v601_v2  ;;  %v687_v8 = vsel %vm483_vm0, %v669_v59, 0  ;;  %v1038_v13 = vsel %vm483_vm0, %v997_v1, 0  ;;  %s419_s18 = scalar_lea.vmem %s1951_s5, %s1433_s21 }
  0x25   : > { %1588 = vmatprep.subr.msk.bf16.mxu1 %vm483_vm0, %v593_v33  ;;  %1526 = vmatprep.mubr.msk.bf16.mxu0 %vm476_vm2, %v772_v45  ;;  %v1016_v4 = vrot.slane %v1014_v0, 1  ;;  %v1023_v17 = vshrl.u32 %v1652_v63, 16  ;;  %v1027_v18 = vshll.u32 %v1653_v10, 16  ;;  %v1467_v19 = vcombine.low %v1093_v16, %v993_v54 }
  0x26   : > { %1527 = vmatmul.mubr.msk.bf16.vlgmr.msra.gmra.mrb[0].mxu0 %vm476_vm2, %v780_v46  ;;  %v1021_v11 = vrot.slane %v1019_v5, 1  ;;  %v1099_v24 = vrot.slane %v1652_v63, 1  ;;  %v1110_v26 = vsel %vm483_vm0, %v1094_v15, 0  ;;  %v1101_v28 = vrot.slane %v1653_v10, 1 }
  0x27   : > { %1531 = vmatpush3.bf16.msra.mxu0 %v860_v47  ;;  %1532 = vmatprep.mubr.msk.bf16.mxu0 %vm476_vm2, %v850_v49  ;;  %v1029_v22 = vrot.slane %v1027_v18, 1  ;;  %v1098_v23 = vrot.slane %v1467_v19, 1 }
  0x28   : > { %1592 = vmatprep.subr.msk.bf16.mxu0 %vm483_vm0, %v919_v50  ;;  %v1025_v21 = vor.u32 %v1023_v17, %v1021_v11  ;;  %v1102_v29 = vsel %vm597_vm3, %v1099_v24, %v1101_v28 }
  0x29   : > { %v1100_v27 = vsel %vm597_vm3, %v1098_v23, %v1099_v24 }
  0x2a   : > { %v1030_v25 = vsel %vm455_vm1, %v1025_v21, %v1029_v22 }
  0x2f   : > { %1509 = vmatmul.mubr.msk.bf16.vlgmr.msra.gmra.mrb[0].mxu1 %vm476_vm2, %v1810_v9  ;;  %v1017_v9 = vor.u32 %v1016_v4, %v1012_v3 }
  0x30   : > { %1513 = vmatpush3.bf16.msra.mxu1 %v610_v56  ;;  %1514 = vmatprep.mubr.msk.bf16.mxu1 %vm476_vm2, %v600_v57 }
  0x31   : > { %1589 = vmatprep.subr.msk.bf16.mxu1 %vm483_vm0, %v669_v59  ;;  %v1022_v14 = vsel %vm455_vm1, %v1017_v9, %v1021_v11 }
  0x32   : > { %1533 = vmatmul.mubr.msk.bf16.vlgmr.msra.gmra.mrb[0].mxu0 %vm476_vm2, %v852_v60 }
  0x33   : > { %1537 = vmatpush3.bf16.msra.mxu0 %v937_v62  ;;  %1538 = vmatprep.mubr.msk.bf16.mxu0 %vm476_vm2, %v1647_v61 }
  0x34   : > { %1593 = vmatprep.subr.msk.bf16.mxu0 %vm483_vm0, %v997_v1 }
  0x3b   : > { %1515 = vmatmul.mubr.msk.bf16.vlgmr.msra.gmra.mrb[0].mxu1 %vm476_vm2, %v602_v6 }
  0x3c   : > { %1519 = vmatpush3.bf16.msra.mxu1 %v687_v8  ;;  %1520 = vmatprep.mubr.msk.bf16.mxu1 %vm476_vm2, %v1649_v7 }
  0x3e   : > { %1539 = vmatmul.mubr.msk.bf16.vlgmr.msra.gmra.mrb[0].mxu0 %vm476_vm2, %v1648_v12 }
  0x3f   : > { %1543 = vmatpush3.bf16.msra.mxu0 %v1038_v13  ;;  %1544 = vmatprep.mubr.msk.bf16.mxu0 %vm476_vm2, %v1022_v14 }
  0x40   : > { %1594 = vmatprep.subr.msk.bf16.mxu0 %vm483_vm0, %v1094_v15 }
  0x47   : > { %1521 = vmatmul.mubr.msk.bf16.vlgmr.msra.gmra.mrb[0].mxu1 %vm476_vm2, %v1650_v20 }
  0x4a   : > { %1545 = vmatmul.mubr.msk.bf16.vlgmr.msra.gmra.mrb[0].mxu0 %vm476_vm2, %v1030_v25 }
  0x4b   : > { %1549 = vmatpush3.bf16.msra.mxu0 %v1110_v26  ;;  %1550 = vmatprep.mubr.msk.bf16.mxu0 %vm476_vm2, %v1100_v27 }
  0x56   : > { %1551 = vmatmul.mubr.msk.bf16.vlgmr.msra.gmra.mrb[0].mxu0 %vm476_vm2, %v1102_v29 }
 0x11a   : > { %v1522_v30 = vpop.f32.mrb[0].mxu1 }
 0x11b   : > { %v723_v31 = vpop.f32.mrb[1].mxu1 }
 0x11c   : > { %v1523_v32 = vpop.f32.mrb[2].mxu1 }
 0x11d   : > { %v726_v33 = vpop.f32.mrb[3].mxu1 }
 0x129   : > { %v1552_v34 = vpop.f32.mrb[0].mxu0 }
 0x12a   : > { %v1554_v36 = vadd.f32 %v1552_v34, %v1522_v30  ;;  %v1146_v37 = vpop.f32.mrb[1].mxu0 }
 0x12b   : > { %v1555_v38 = vadd.f32 %v1146_v37, %v723_v31  ;;  %v1553_v39 = vpop.f32.mrb[2].mxu0 }
 0x12c   : > { %v1174_v40 = vadd.f32 %v1554_v36, %v1470_v35  ;;  %v1556_v41 = vadd.f32 %v1553_v39, %v1523_v32  ;;  %v1149_v42 = vpop.f32.mrb[3].mxu0 }
 0x12d   : > { %v1172_v43 = vadd.f32 %v1555_v38, %v1470_v35  ;;  %v1557_v44 = vadd.f32 %v1149_v42, %v726_v33 }
 0x12e   : > { %1178 = vst [vmem:[%s419_s18 + $0x10] sm:$0xff] %v1174_v40  ;;  %v1175_v45 = vadd.f32 %v1556_v41, %v1470_v35  ;;  %v1192_v50 = vmul.f32 %v1174_v40, %v1174_v40 }
 0x12f   : > { %1176 = vst [vmem:[%s419_s18] sm:$0xff] %v1172_v43  ;;  %v1173_v46 = vadd.f32 %v1557_v44, %v1470_v35  ;;  %v1190_v47 = vmul.f32 %v1172_v43, %v1172_v43 }
 0x130   : > { %1179 = vst [vmem:[%s419_s18 + $0x18] sm:$0xff] %v1175_v45  ;;  %v1193_v53 = vmul.f32 %v1175_v45, %v1175_v45 }
 0x131   : > { %1177 = vst [vmem:[%s419_s18 + $0x8] sm:$0xff] %v1173_v46  ;;  %v1180_v48 = vadd.f32 %v1173_v46, %v1172_v43  ;;  %v1191_v49 = vmul.f32 %v1173_v46, %v1173_v46 }
 0x133   : > { %v1181_v51 = vadd.f32 %v1180_v48, %v1174_v40  ;;  %v1194_v52 = vadd.f32 %v1191_v49, %v1190_v47 }
 0x135   : > { %v1182_v54 = vadd.f32 %v1181_v51, %v1175_v45  ;;  %v1195_v55 = vadd.f32 %v1194_v52, %v1192_v50 }
 0x137   : > { %v1183_v56 = vrot.slane %v1182_v54, 4  ;;  %v1196_v57 = vadd.f32 %v1195_v55, %v1193_v53 }
 0x139   : > { %v1184_v58 = vadd.f32 %v1183_v56, %v1182_v54  ;;  %v1197_v59 = vrot.slane %v1196_v57, 4 }
 0x13b   : > { %v1185_v60 = vrot.slane %v1184_v58, 2  ;;  %v1198_v61 = vadd.f32 %v1197_v59, %v1196_v57 }
 0x13d   : > { %v1186_v62 = vadd.f32 %v1185_v60, %v1184_v58  ;;  %v1199_v63 = vrot.slane %v1198_v61, 2 }
 0x13f   : > { %v1187_v0 = vrot.slane %v1186_v62, 1  ;;  %v1200_v1 = vadd.f32 %v1199_v63, %v1198_v61 }
 0x141   : > { %v1188_v2 = vadd.f32 %v1187_v0, %v1186_v62  ;;  %v1201_v3 = vrot.slane %v1200_v1, 1 }
 0x143   : > { %1189 = vst [vmem:[%s426_s12] sm:$0x1] %v1188_v2  ;;  %v1202_v4 = vadd.f32 %v1201_v3, %v1200_v1 }
 0x145   : > { %1203 = vst [vmem:[%s433_s15] sm:$0x1] %v1202_v4 }
 0x146 PF: > { %s18_s28 = sadd.s32 1, %s1693_s28   ;;  %s1954_s24 = smov %s1685_s26 }
 0x147   : > { %p15_p10 = scmp.ge.s32.totalorder %s18_s28, 66   ;;  %s1955_s25 = smov %s1689_s27 }
 0x148   : > { %s1956_s26 = smov %s1959_s29  ;;  %s1957_s27 = smov %s1963_s30 }
 0x149   :  { %17 = sbr.rel (!%p15_p10) target bundleno = 3 (0x3), region = 100 }

// kernel: upblock2d_forward.5
= control target key start
LH: loop header
LB: loop body
LE: loop exit
PB: predicated region body
PF: predicated region fallthrough
CT: control target
= control target key end

     0   :  { %s1759_s24 = smov 0   ;;  %s1761_s25 = smov 0   ;;  %s1973_s0 = inlined_call_operand.vmem [shape: bf16[2,34,34,4], index: 0, kind: input, shape index: {}, may-alias: {0,1,2}]   ;;  %s1974_s1 = inlined_call_operand.vmem [shape: bf16[2,34,34,4], index: 1, kind: input, shape index: {}, may-alias: {0,1,2}]   ;;  %s1975_s2 = inlined_call_operand.vmem [shape: bf16[2,34,34,4], index: 2, kind: input, shape index: {}, may-alias: {0,1,2}]   ;;  %s1976_s3 = inlined_call_operand.vmem [shape: bf16[36,128], index: 3, kind: input, shape index: {}]   ;;  %s1977_s4 = inlined_call_operand.vmem [shape: f32[1,128], index: 4, kind: input, shape index: {}]   ;;  %s1978_s5 = inlined_call_operand.vmem [shape: f32[2,32,32,128], index: 5, kind: output, shape index: {0}]   ;;  %s1979_s6 = inlined_call_operand.vmem [shape: f32[2,32,1,128], index: 6, kind: output, shape index: {1}]   ;;  %s1980_s7 = inlined_call_operand.vmem [shape: f32[2,32,1,128], index: 7, kind: output, shape index: {2}]  }
   0x1   :  { %s1763_s26 = smov 0   ;;  %s1765_s27 = smov 0  }
   0x2   :  { %s1767_s28 = smov 0  }
   0x3 LB: > { %s27_s29 = sadd.s32 1, %s1709_s26  ;;  %s30_s30 = sadd.s32 1, %s1713_s27  ;;  %s1717_s28 = sphi %s1767_s28, %s18_s28   ;;  %s1713_s27 = sphi %s1765_s27, %s1984_s27   ;;  %s1709_s26 = sphi %s1763_s26, %s1983_s26   ;;  %s1705_s25 = sphi %s1761_s25, %s1982_s25   ;;  %s1701_s24 = sphi %s1759_s24, %s1981_s24  }
   0x4   : > { %p28_p0 = scmp.ge.s32.totalorder %s27_s29, 32  ;;  %p1443_p1 = scmp.ge.s32.totalorder %s1717_s28, 1 }
   0x5   : > { %p306_p2 = scmp.lt.s32.totalorder %s1717_s28, 65 }
   0x6   : > { %s1986_s29 = smov (%p28_p0, %s27_s29), 0  ;;  %s1988_s30 = smov (!%p28_p0, %s30_s30), %s1713_s27 }
   0x7   : > { %p307_p3 = pnand %p1443_p1, %p306_p2  ;;  %p32_p4 = scmp.ge.s32.totalorder %s1988_s30, 2 }
   0x8   : > { %v1659_v0 = vld [vmem:[%s1976_s3] ss:$0 sps:$4 sm:$0xcc] (!%p307_p3)   ;;  %vm487_vm0 = vcmask (!%p307_p3), 1041408   ;;  %v755_v1 = vld [vmem:[%s1976_s3 + $0x8] sm:$0x3] (!%p307_p3) }
   0x9   : > { %s1990_s30 = smov (%p32_p4, %s1988_s30), 0  ;;  %310 = sbr.rel (%p307_p3) target bundleno = 326 (0x146), region = 40 }
   0xa   : > { %p380_p5 = scmp.lt.s32.totalorder (!%p307_p3), %s1705_s25, 1  ;;  %p382_p6 = scmp.lt.s32.totalorder (!%p307_p3), %s1701_s24, 33  ;;  %v479_v2 = vrot.slane (!%p307_p3), %v1659_v0, 2  ;;  %1610 = vmatprep.subr.msk.bf16.mxu0 (!%p307_p3), %vm487_vm0, %v755_v1  ;;  %v796_v3 = vsel (!%p307_p3), %vm487_vm0, %v755_v1, 0  ;;  %v439_v6 = vld [vmem:[%s1976_s3] sm:$0x3] (!%p307_p3) }
   0xb   : > { %s389_s12 = sadd.s32 (!%p307_p3), 1, %s1701_s24  ;;  %1545 = vmatpush3.bf16.msra.mxu0 (!%p307_p3), %v796_v3  ;;  %v1806_v4 = vld [vmem:[%s1976_s3 + $0x8] ss:$0 sps:$4 sm:$0xcc] (!%p307_p3)   ;;  %s400_s20 = sadd.s32 (!%p307_p3), 2, %s1701_s24  ;;  %vm480_vm2 = vcmask (!%p307_p3), 31744  }
   0xc   : > { %1606 = vmatprep.subr.msk.bf16.mxu1 (!%p307_p3), %vm487_vm0, %v479_v2  ;;  %v489_v5 = vsel (!%p307_p3), %vm487_vm0, %v479_v2, 0  ;;  %p392_p7 = scmp.lt.s32.totalorder (!%p307_p3), %s389_s12, 33  ;;  %v864_v7 = vrot.slane (!%p307_p3), %v1806_v4, 2  ;;  %p403_p8 = scmp.lt.s32.totalorder (!%p307_p3), %s400_s20, 33  ;;  %vm455_vm1 = vsmask.f32 (!%p307_p3), 7424 }
   0xd   : > { %1521 = vmatpush3.bf16.msra.mxu1 (!%p307_p3), %v489_v5  ;;  %v545_v21 = vsel (!%p307_p3), %vm487_vm0, %v439_v6, 0  ;;  %v597_v35 = vld [vmem:[%s1976_s3 + $0x4] sm:$0x3] (!%p307_p3)  ;;  %vm601_vm3 = vcmask (!%p307_p3), 1046528   ;;  %v931_v52 = vld [vmem:[%s1976_s3 + $0xc] sm:$0x3] (!%p307_p3) }
   0xe   : > { %1607 = vmatprep.subr.msk.bf16.mxu1 (!%p307_p3), %vm487_vm0, %v439_v6  ;;  %1611 = vmatprep.subr.msk.bf16.mxu0 (!%p307_p3), %vm487_vm0, %v864_v7  ;;  %v872_v49 = vsel (!%p307_p3), %vm487_vm0, %v864_v7, 0  ;;  %v1672_v55 = vld [vmem:[%s1976_s3 + $0x4] ss:$0 sps:$4 sm:$0xcc] (!%p307_p3)   ;;  %v614_v59 = vsel (!%p307_p3), %vm487_vm0, %v597_v35, 0  ;;  %v949_v2 = vsel (!%p307_p3), %vm487_vm0, %v931_v52, 0 }
   0xf   : > { %v1670_v61 = vld [vmem:[%s1976_s3 + $0xc] ss:$0 sps:$4 sm:$0xcc] (!%p307_p3)   ;;  %v687_v62 = vrot.slane (!%p307_p3), %v1672_v55, 2  ;;  %p413_p9 = scmp.lt.s32.totalorder (!%p307_p3), %s1701_s24, 31 }
  0x10   : > { %s1992_s25 = smov (!%p380_p5, %s1705_s25), 1  ;;  %s1994_s12 = smov (!%p392_p7, %s389_s12), 33  ;;  %v1046_v3 = vrot.slane %v1670_v61, 2 }
  0x11   : > { %s383_s15 = scalar_select %p382_p6, %s1701_s24, 33 }
  0x12   : > { %s1815_s18 = smul.u32 170, %s1992_s25  ;;  %s1996_s20 = smov (!%p403_p8, %s400_s20), 33 }
  0x13   : > { %s1615_s19 = smul.u32 5, %s383_s15  ;;  %s1998_s24 = smov (!%p413_p9, %s1701_s24), 31 }
  0x14   : > { %s1617_s23 = smul.u32 5, %s1994_s12  ;;  %s1450_s9 = sshll.u32 %s1992_s25, 5 }
  0x15   : > { %s386_s21 = sadd.s32 %s1815_s18, %s1615_s19  ;;  %s1618_s16 = smul.u32 5, %s1996_s20 }
  0x16   : > { %s1444_s22 = sshll.u32 %s386_s21, 2  ;;  %s396_s11 = sadd.s32 %s1617_s23, %s1815_s18 }
  0x17   : > { %s1827_s10 = scalar_lea.vmem %s1973_s0, %s1444_s22  ;;  %s1445_s13 = sshll.u32 %s396_s11, 2 }
  0x18   : > { %v435_v8 = vld [vmem:[%s1827_s10] sm:$0xf]  ;;  %v1832_v9 = vld [vmem:[%s1827_s10 + $0x4] sm:$0xf]  ;;  %v1836_v11 = vld [vmem:[%s1827_s10 + $0x8] sm:$0xff]   ;;  %s1841_s15 = scalar_lea.vmem %s1974_s1, %s1445_s13  ;;  %s407_s17 = sadd.s32 %s1618_s16, %s1815_s18 }
  0x19   : > { %v1452_v10 = vcombine.low %v435_v8, %v1832_v9  ;;  %v1844_v12 = vld [vmem:[%s1827_s10 + $0x10] ss:$0 sps:$4 sm:$0x11]   ;;  %v464_v15 = vshll.u32 %v1836_v11, 16  ;;  %v468_v16 = vshrl.u32 %v1836_v11, 16  ;;  %v1849_v17 = vld [vmem:[%s1841_s15 + $0x8] sm:$0xff]  }
  0x1a   : > { %v472_v18 = vshll.u32 %v1844_v12, 16  ;;  %v750_v19 = vld [vmem:[%s1841_s15] sm:$0xf]  ;;  %v751_v20 = vld [vmem:[%s1841_s15 + $0x4] sm:$0xf]  ;;  %v777_v25 = vshll.u32 %v1849_v17, 16 }
  0x1b   : > { %v457_v13 = vshrl.u32 %v1452_v10, 16  ;;  %v459_v14 = vshll.u32 %v1452_v10, 16  ;;  %v466_v23 = vrot.slane %v464_v15, 1  ;;  %v1468_v24 = vcombine.low %v750_v19, %v751_v20  ;;  %v1666_v32 = vld [vmem:[%s1841_s15 + $0x10] ss:$0 sps:$4 sm:$0x11]  }
  0x1c   : > { %v474_v26 = vrot.slane %v472_v18, 1  ;;  %v781_v27 = vshrl.u32 %v1849_v17, 16  ;;  %s1446_s19 = sshll.u32 %s407_s17, 2  ;;  %v779_v33 = vrot.slane %v777_v25, 1  ;;  %v851_v34 = vld [vmem:[%s1841_s15] sm:$0xe] }
  0x1d   : > { %v461_v22 = vrot.slane %v459_v14, 1  ;;  %v470_v29 = vor.u32 %v468_v16, %v466_v23  ;;  %v770_v30 = vshrl.u32 %v1468_v24, 16  ;;  %v772_v31 = vshll.u32 %v1468_v24, 16  ;;  %v596_v36 = vld [vmem:[%s1827_s10] sm:$0xe]  ;;  %s1867_s8 = scalar_lea.vmem %s1975_s2, %s1446_s19  ;;  %v1674_v24 = vld [vmem:[%s1841_s15 + $0x8] sm:$0xff]   ;;  %s425_s10 = sadd.s32 %s1450_s9, %s1998_s24 }
  0x1e   : > { %v785_v40 = vshll.u32 %v1666_v32, 16  ;;  %v783_v41 = vor.u32 %v781_v27, %v779_v33  ;;  %v1473_v42 = vcombine.low %v851_v34, %v751_v20  ;;  %v857_v43 = vrot.slane %v1849_v17, 1  ;;  %v1004_v56 = vld [vmem:[%s1867_s8] sm:$0xf]  ;;  %v1005_v57 = vld [vmem:[%s1867_s8 + $0x4] sm:$0xf]  ;;  %s426_s12 = scalar_lea.vmem %s1979_s6, %s425_s10 }
  0x1f   : > { %v462_v28 = vor.u32 %v461_v22, %v457_v13  ;;  %v475_v38 = vsel %vm455_vm1, %v470_v29, %v474_v26  ;;  %v774_v39 = vrot.slane %v772_v31, 1  ;;  %v1460_v50 = vcombine.low %v596_v36, %v1832_v9  ;;  %v1669_v1 = vld [vmem:[%s1867_s8] sm:$0xff]   ;;  %v1676_v4 = vld [vmem:[%s1867_s8 + $0x8] sm:$0xff]   ;;  %v1110_v19 = vld [vmem:[%s1976_s3 + $0x10] sm:$0x3]  ;;  %s1448_s17 = sshll.u32 %s1992_s25, 7 }
  0x20   : > { %v787_v45 = vrot.slane %v785_v40, 1  ;;  %v856_v46 = vrot.slane %v1473_v42, 1  ;;  %v603_v54 = vrot.slane %v1836_v11, 1  ;;  %v859_v58 = vrot.slane %v1666_v32, 1  ;;  %v1671_v16 = vld [vmem:[%s1867_s8 + $0x8] sm:$0xff]  }
  0x21   : > { %v467_v37 = vsel %vm455_vm1, %v462_v28, %v466_v23  ;;  %v775_v44 = vor.u32 %v774_v39, %v770_v30  ;;  %v602_v53 = vrot.slane %v1460_v50, 1  ;;  %v1481_v63 = vcombine.low %v1004_v56, %v1005_v57  ;;  %v1109_v20 = vld [vmem:[%s1867_s8] sm:$0xe]  ;;  %v1490_v39 = vld [vmem:[%s1977_s4] ss:$0 sm:$0xff] }
  0x22   : > { %1522 = vmatprep.mubr.msk.bf16.mxu1 %vm480_vm2, %v467_v37  ;;  %v788_v48 = vsel %vm455_vm1, %v783_v41, %v787_v45  ;;  %v858_v51 = vsel %vm601_vm3, %v856_v46, %v857_v43  ;;  %v860_v0 = vsel %vm601_vm3, %v857_v43, %v859_v58  ;;  %v605_v6 = vrot.slane %v1844_v12, 1  ;;  %v1677_v12 = vld [vmem:[%s1867_s8 + $0x10] ss:$0 sps:$4 sm:$0x11]  }
  0x23   : > { %1523 = vmatmul.mubr.msk.bf16.vlgmr.msra.gmra.mrb[0].mxu1 %vm480_vm2, %v475_v38  ;;  %v780_v47 = vsel %vm455_vm1, %v775_v44, %v779_v33  ;;  %v604_v60 = vsel %vm601_vm3, %v602_v53, %v603_v54  ;;  %v1026_v5 = vshll.u32 %v1481_v63, 16  ;;  %v1024_v7 = vshrl.u32 %v1481_v63, 16 }
  0x24   : > { %1527 = vmatpush3.bf16.msra.mxu1 %v545_v21  ;;  %1528 = vmatprep.mubr.msk.bf16.mxu1 %vm480_vm2, %v1452_v10  ;;  %v1031_v9 = vshll.u32 %v1676_v4, 16  ;;  %v606_v10 = vsel %vm601_vm3, %v603_v54, %v605_v6  ;;  %v695_v13 = vsel %vm487_vm0, %v687_v62, 0  ;;  %v1054_v17 = vsel %vm487_vm0, %v1046_v3, 0 }
  0x25   : > { %1608 = vmatprep.subr.msk.bf16.mxu1 %vm487_vm0, %v597_v35  ;;  %1546 = vmatprep.mubr.msk.bf16.mxu0 %vm480_vm2, %v780_v47  ;;  %v1028_v8 = vrot.slane %v1026_v5, 1  ;;  %v1035_v21 = vshrl.u32 %v1676_v4, 16  ;;  %v1039_v22 = vshll.u32 %v1677_v12, 16  ;;  %v1487_v23 = vcombine.low %v1109_v20, %v1005_v57 }
  0x26   : > { %1547 = vmatmul.mubr.msk.bf16.vlgmr.msra.gmra.mrb[0].mxu0 %vm480_vm2, %v788_v48  ;;  %v1033_v15 = vrot.slane %v1031_v9, 1  ;;  %v1115_v28 = vrot.slane %v1676_v4, 1  ;;  %v1126_v30 = vsel %vm487_vm0, %v1110_v19, 0  ;;  %v1117_v32 = vrot.slane %v1677_v12, 1 }
  0x27   : > { %1551 = vmatpush3.bf16.msra.mxu0 %v872_v49  ;;  %1552 = vmatprep.mubr.msk.bf16.mxu0 %vm480_vm2, %v858_v51  ;;  %v1029_v14 = vor.u32 %v1028_v8, %v1024_v7  ;;  %v1041_v26 = vrot.slane %v1039_v22, 1  ;;  %v1114_v27 = vrot.slane %v1487_v23, 1 }
  0x28   : > { %1612 = vmatprep.subr.msk.bf16.mxu0 %vm487_vm0, %v931_v52  ;;  %v1037_v25 = vor.u32 %v1035_v21, %v1033_v15  ;;  %v1118_v33 = vsel %vm601_vm3, %v1115_v28, %v1117_v32 }
  0x29   : > { %v1034_v18 = vsel %vm455_vm1, %v1029_v14, %v1033_v15  ;;  %v1116_v31 = vsel %vm601_vm3, %v1114_v27, %v1115_v28 }
  0x2a   : > { %v1042_v29 = vsel %vm455_vm1, %v1037_v25, %v1041_v26 }
  0x2f   : > { %1529 = vmatmul.mubr.msk.bf16.vlgmr.msra.gmra.mrb[0].mxu1 %vm480_vm2, %v1836_v11  ;;  %v1673_v11 = vld [vmem:[%s1841_s15] sm:$0xff]   ;;  %s1447_s15 = sshll.u32 %s1998_s24, 2 }
  0x30   : > { %1533 = vmatpush3.bf16.msra.mxu1 %v614_v59  ;;  %1534 = vmatprep.mubr.msk.bf16.mxu1 %vm480_vm2, %v604_v60  ;;  %s417_s19 = sadd.s32 %s1448_s17, %s1447_s15  ;;  %s433_s15 = scalar_lea.vmem %s1980_s7, %s425_s10 }
  0x31   : > { %1609 = vmatprep.subr.msk.bf16.mxu1 %vm487_vm0, %v687_v62  ;;  %s1449_s21 = sshll.u32 %s417_s19, 3 }
  0x32   : > { %1553 = vmatmul.mubr.msk.bf16.vlgmr.msra.gmra.mrb[0].mxu0 %vm480_vm2, %v860_v0  ;;  %s419_s18 = scalar_lea.vmem %s1978_s5, %s1449_s21 }
  0x33   : > { %1557 = vmatpush3.bf16.msra.mxu0 %v949_v2  ;;  %1558 = vmatprep.mubr.msk.bf16.mxu0 %vm480_vm2, %v1669_v1 }
  0x34   : > { %1613 = vmatprep.subr.msk.bf16.mxu0 %vm487_vm0, %v1046_v3 }
  0x3b   : > { %1535 = vmatmul.mubr.msk.bf16.vlgmr.msra.gmra.mrb[0].mxu1 %vm480_vm2, %v606_v10 }
  0x3c   : > { %1539 = vmatpush3.bf16.msra.mxu1 %v695_v13  ;;  %1540 = vmatprep.mubr.msk.bf16.mxu1 %vm480_vm2, %v1673_v11 }
  0x3e   : > { %1559 = vmatmul.mubr.msk.bf16.vlgmr.msra.gmra.mrb[0].mxu0 %vm480_vm2, %v1671_v16 }
  0x3f   : > { %1563 = vmatpush3.bf16.msra.mxu0 %v1054_v17  ;;  %1564 = vmatprep.mubr.msk.bf16.mxu0 %vm480_vm2, %v1034_v18 }
  0x40   : > { %1614 = vmatprep.subr.msk.bf16.mxu0 %vm487_vm0, %v1110_v19 }
  0x47   : > { %1541 = vmatmul.mubr.msk.bf16.vlgmr.msra.gmra.mrb[0].mxu1 %vm480_vm2, %v1674_v24 }
  0x4a   : > { %1565 = vmatmul.mubr.msk.bf16.vlgmr.msra.gmra.mrb[0].mxu0 %vm480_vm2, %v1042_v29 }
  0x4b   : > { %1569 = vmatpush3.bf16.msra.mxu0 %v1126_v30  ;;  %1570 = vmatprep.mubr.msk.bf16.mxu0 %vm480_vm2, %v1116_v31 }
  0x56   : > { %1571 = vmatmul.mubr.msk.bf16.vlgmr.msra.gmra.mrb[0].mxu0 %vm480_vm2, %v1118_v33 }
 0x11a   : > { %v1542_v34 = vpop.f32.mrb[0].mxu1 }
 0x11b   : > { %v731_v35 = vpop.f32.mrb[1].mxu1 }
 0x11c   : > { %v1543_v36 = vpop.f32.mrb[2].mxu1 }
 0x11d   : > { %v734_v37 = vpop.f32.mrb[3].mxu1 }
 0x129   : > { %v1572_v38 = vpop.f32.mrb[0].mxu0 }
 0x12a   : > { %v1574_v40 = vadd.f32 %v1572_v38, %v1542_v34  ;;  %v1162_v41 = vpop.f32.mrb[1].mxu0 }
 0x12b   : > { %v1575_v42 = vadd.f32 %v1162_v41, %v731_v35  ;;  %v1573_v43 = vpop.f32.mrb[2].mxu0 }
 0x12c   : > { %v1190_v44 = vadd.f32 %v1574_v40, %v1490_v39  ;;  %v1576_v45 = vadd.f32 %v1573_v43, %v1543_v36  ;;  %v1165_v46 = vpop.f32.mrb[3].mxu0 }
 0x12d   : > { %v1188_v47 = vadd.f32 %v1575_v42, %v1490_v39  ;;  %v1577_v48 = vadd.f32 %v1165_v46, %v734_v37 }
 0x12e   : > { %1194 = vst [vmem:[%s419_s18 + $0x10] sm:$0xff] %v1190_v44  ;;  %v1191_v49 = vadd.f32 %v1576_v45, %v1490_v39  ;;  %v1208_v54 = vmul.f32 %v1190_v44, %v1190_v44 }
 0x12f   : > { %1192 = vst [vmem:[%s419_s18] sm:$0xff] %v1188_v47  ;;  %v1189_v50 = vadd.f32 %v1577_v48, %v1490_v39  ;;  %v1206_v51 = vmul.f32 %v1188_v47, %v1188_v47 }
 0x130   : > { %1195 = vst [vmem:[%s419_s18 + $0x18] sm:$0xff] %v1191_v49  ;;  %v1209_v57 = vmul.f32 %v1191_v49, %v1191_v49 }
 0x131   : > { %1193 = vst [vmem:[%s419_s18 + $0x8] sm:$0xff] %v1189_v50  ;;  %v1196_v52 = vadd.f32 %v1189_v50, %v1188_v47  ;;  %v1207_v53 = vmul.f32 %v1189_v50, %v1189_v50 }
 0x133   : > { %v1197_v55 = vadd.f32 %v1196_v52, %v1190_v44  ;;  %v1210_v56 = vadd.f32 %v1207_v53, %v1206_v51 }
 0x135   : > { %v1198_v58 = vadd.f32 %v1197_v55, %v1191_v49  ;;  %v1211_v59 = vadd.f32 %v1210_v56, %v1208_v54 }
 0x137   : > { %v1199_v60 = vrot.slane %v1198_v58, 4  ;;  %v1212_v61 = vadd.f32 %v1211_v59, %v1209_v57 }
 0x139   : > { %v1200_v62 = vadd.f32 %v1199_v60, %v1198_v58  ;;  %v1213_v63 = vrot.slane %v1212_v61, 4 }
 0x13b   : > { %v1201_v0 = vrot.slane %v1200_v62, 2  ;;  %v1214_v1 = vadd.f32 %v1213_v63, %v1212_v61 }
 0x13d   : > { %v1202_v2 = vadd.f32 %v1201_v0, %v1200_v62  ;;  %v1215_v3 = vrot.slane %v1214_v1, 2 }
 0x13f   : > { %v1203_v4 = vrot.slane %v1202_v2, 1  ;;  %v1216_v5 = vadd.f32 %v1215_v3, %v1214_v1 }
 0x141   : > { %v1204_v6 = vadd.f32 %v1203_v4, %v1202_v2  ;;  %v1217_v7 = vrot.slane %v1216_v5, 1 }
 0x143   : > { %1205 = vst [vmem:[%s426_s12] sm:$0x1] %v1204_v6  ;;  %v1218_v8 = vadd.f32 %v1217_v7, %v1216_v5 }
 0x145   : > { %1219 = vst [vmem:[%s433_s15] sm:$0x1] %v1218_v8 }
 0x146 PF: > { %s18_s28 = sadd.s32 1, %s1717_s28   ;;  %s1981_s24 = smov %s1709_s26 }
 0x147   : > { %p15_p10 = scmp.ge.s32.totalorder %s18_s28, 66   ;;  %s1982_s25 = smov %s1713_s27 }
 0x148   : > { %s1983_s26 = smov %s1986_s29  ;;  %s1984_s27 = smov %s1990_s30 }
 0x149   :  { %17 = sbr.rel (!%p15_p10) target bundleno = 3 (0x3), region = 100 }

</bundles_post_ra>
